<compile_context>
chip_gen: v6e
topology: v6e:2x2x1
jax: 0.10.0
libtpu: 0.0.40
codegen_flags: <defaults>
</compile_context>

<pallas_src>
import numpy as np
import jax
import jax.numpy as jnp
from jax import lax
from jax.experimental import pallas as pl
from jax.experimental.pallas import tpu as pltpu


def _bigru_fc_kernel(x_ref, wih_ref, whh_ref, gxb_ref, bhn_ref, wfc_ref, bfc_ref,
                     out_ref, gx_ref, hseq_f, hseq_b):
    """Single-invocation kernel: full sequence resident in VMEM.

    x_ref:   (T, B, E)   time-major input (B padded to a multiple of 8)
    wih:     (E, 6H)     fused input->gates weights, cols [r_f z_f n_f r_b z_b n_b]
    whh:     (2H, 6H)    block-diagonal hidden->gates weights
    gxb:     (1, 6H)     b_ih (all gates) + b_hh (r,z gates) pre-folded
    bhn:     (1, 2H)     n-gate hidden bias [fwd | bwd] (stays inside r*(.))
    wfc:     (2H, O_pad), bfc: (1, O_pad)   lane-dense padded FC
    out_ref: (T, B, O_pad)
    """
    T, B, E = x_ref.shape
    H2 = whh_ref.shape[0]          # 2H
    H = H2 // 2
    H3 = 3 * H

    # ---- fused input projection for BOTH directions: one MXU pass -----------
    # (B is sublane-padded, so this reshape is relayout-free.)
    x_flat = x_ref[...].reshape(T * B, E)
    gx = jnp.dot(x_flat, wih_ref[...], preferred_element_type=jnp.float32)
    gx = gx + gxb_ref[...]
    gx_ref[...] = gx.reshape(T, B, 6 * H)

    whh = whh_ref[...]             # (2H, 6H)
    bhn = bhn_ref[...]             # (1, 2H)

    def step(i_fwd, i_bwd, h):
        # h[:, :H] : forward hidden state entering time i_fwd
        # h[:, H:] : backward hidden state entering time i_bwd
        gh = jnp.dot(h.astype(whh.dtype), whh,
                     preferred_element_type=jnp.float32)        # (B, 6H)
        gx_f = gx_ref[i_fwd]                                    # (B, 6H) fwd cols
        gx_b = gx_ref[i_bwd]                                    # (B, 6H) bwd cols

        # forward direction (gate order r, z, n — PyTorch convention)
        r_f = jax.nn.sigmoid(gx_f[:, 0:H] + gh[:, 0:H])
        z_f = jax.nn.sigmoid(gx_f[:, H:2 * H] + gh[:, H:2 * H])
        n_f = jnp.tanh(gx_f[:, 2 * H:H3] + r_f * (gh[:, 2 * H:H3] + bhn[:, 0:H]))
        h_f = (1.0 - z_f) * n_f + z_f * h[:, 0:H]

        # backward direction
        r_b = jax.nn.sigmoid(gx_b[:, H3:H3 + H] + gh[:, H3:H3 + H])
        z_b = jax.nn.sigmoid(gx_b[:, H3 + H:H3 + 2 * H] + gh[:, H3 + H:H3 + 2 * H])
        n_b = jnp.tanh(gx_b[:, H3 + 2 * H:H3 + H3]
                       + r_b * (gh[:, H3 + 2 * H:H3 + H3] + bhn[:, H:2 * H]))
        h_b = (1.0 - z_b) * n_b + z_b * h[:, H:2 * H]

        hseq_f[i_fwd] = h_f
        hseq_b[i_bwd] = h_b
        return jnp.concatenate([h_f, h_b], axis=-1)

    h0 = jnp.zeros((B, 2 * H), jnp.float32)
    if T <= 32:
        # fully unrolled: straight-line code gives the LLO scheduler visibility
        h = h0
        for i in range(T):
            h = step(i, T - 1 - i, h)
    else:
        # TODO(synk): for large T, stream x/gx in time chunks via a grid instead
        # of keeping the full sequence VMEM-resident (needed for v7x 64 MiB VMEM).
        lax.fori_loop(0, T, lambda i, h: step(i, T - 1 - i, h), h0)

    # ---- epilogue: ReLU + Linear (split FC, no concat relayout) -------------
    hf = jnp.maximum(hseq_f[...].reshape(T * B, H), 0.0)
    hb = jnp.maximum(hseq_b[...].reshape(T * B, H), 0.0)
    logits = (jnp.dot(hf.astype(wfc_ref.dtype), wfc_ref[0:H, :],
                      preferred_element_type=jnp.float32)
              + jnp.dot(hb.astype(wfc_ref.dtype), wfc_ref[H:2 * H, :],
                        preferred_element_type=jnp.float32)
              + bfc_ref[...])
    out_ref[...] = logits.reshape(T, B, out_ref.shape[-1]).astype(out_ref.dtype)


def _round_up(x, m):
    return -(-x // m) * m


def toxic_segmenter_forward(text, params, use_bf16_matmul=False):
    """text: (B, T, E) or (T, E) -> logits (B, T, O)."""
    if text.ndim == 2:                       # mirror the torch `.view(1, T, E)` path
        text = text[None]
    B, T, E = text.shape
    H = params["w_hh_f"].shape[1]
    O = params["w_fc"].shape[0]

    B_pad = _round_up(max(B, 8), 8)          # sublane-aligned batch
    O_pad = _round_up(max(O, 128), 128)      # lane-dense output
    # On v6e/v7x set use_bf16_matmul=True: matmul operands in bf16, gate math
    # and hidden state stay f32 (preferred_element_type=f32).
    mm_dtype = jnp.bfloat16 if use_bf16_matmul else jnp.float32

    # time-major, batch padded to the sublane size
    x_tm = jnp.transpose(text, (1, 0, 2)).astype(jnp.float32)
    if B_pad != B:
        x_tm = jnp.pad(x_tm, ((0, 0), (0, B_pad - B), (0, 0)))
    x_tm = x_tm.astype(mm_dtype)

    # fused input-projection weight (E, 6H), columns [r_f z_f n_f r_b z_b n_b]
    w_ih_all = jnp.concatenate(
        [params["w_ih_f"].T, params["w_ih_b"].T], axis=1).astype(mm_dtype)

    # block-diagonal hidden-projection weight (2H, 6H)
    zeros = jnp.zeros((H, 3 * H), jnp.float32)
    w_hh_bd = jnp.concatenate([
        jnp.concatenate([params["w_hh_f"].T, zeros], axis=1),
        jnp.concatenate([zeros, params["w_hh_b"].T], axis=1),
    ], axis=0).astype(mm_dtype)

    # fold b_ih (all gates) + b_hh (r,z gates only) into the input-projection
    # bias; the n-gate hidden bias must stay inside the r * (.) term.
    def fold(b_ih, b_hh):
        return jnp.concatenate([b_ih[:2 * H] + b_hh[:2 * H], b_ih[2 * H:]])
    gx_bias = jnp.concatenate(
        [fold(params["b_ih_f"], params["b_hh_f"]),
         fold(params["b_ih_b"], params["b_hh_b"])])[None, :].astype(jnp.float32)
    bhh_n = jnp.concatenate(
        [params["b_hh_f"][2 * H:],
         params["b_hh_b"][2 * H:]])[None, :].astype(jnp.float32)

    # FC weight (2H, O) padded to lane-dense (2H, O_pad)
    w_fc = jnp.pad(params["w_fc"].T, ((0, 0), (0, O_pad - O))).astype(mm_dtype)
    b_fc = jnp.pad(params["b_fc"], (0, O_pad - O))[None, :].astype(jnp.float32)

    args = (x_tm, w_ih_all, w_hh_bd, gx_bias, bhh_n, w_fc, b_fc)

    # explicit scoped-VMEM budget: activations + scratch + output + weights
    itemsize = 4
    vmem_bytes = itemsize * (
        T * B_pad * (E + 6 * H + 2 * H + O_pad)        # x + gx + hseq_f/b + out
        + E * 6 * H + 2 * H * 6 * H + 2 * H * O_pad    # weights
        + 8 * H + O_pad)                               # biases
    vmem_limit = int(min(max(4 * vmem_bytes, 32 << 20), 64 << 20))

    vmem = pl.BlockSpec(memory_space=pltpu.MemorySpace.VMEM)
    out_tm = pl.pallas_call(
        _bigru_fc_kernel,
        out_shape=jax.ShapeDtypeStruct((T, B_pad, O_pad), jnp.float32),
        in_specs=[vmem] * len(args),
        out_specs=vmem,
        scratch_shapes=[
            pltpu.VMEM((T, B_pad, 6 * H), jnp.float32),   # gx (both directions)
            pltpu.VMEM((T, B_pad, H), jnp.float32),       # forward hidden states
            pltpu.VMEM((T, B_pad, H), jnp.float32),       # backward hidden states
        ],
        compiler_params=pltpu.CompilerParams(vmem_limit_bytes=vmem_limit),
    )(*args)

    return jnp.transpose(out_tm, (1, 0, 2))[:B, :, :O]   # (B, T, O)


def init_params(key, embedding_dim, hidden_size, output_dim, is_bidirectional=True):
    """Deterministic init mimicking PyTorch's uniform(-1/sqrt(fan), 1/sqrt(fan))."""
    E, H, O = embedding_dim, hidden_size, output_dim
    kg = 1.0 / np.sqrt(H)
    kf = 1.0 / np.sqrt((int(is_bidirectional) + 1) * H)
    ks = jax.random.split(key, 10)
    u = lambda k, shape, b: jax.random.uniform(k, shape, jnp.float32, -b, b)
    return dict(
        w_ih_f=u(ks[0], (3 * H, E), kg), w_hh_f=u(ks[1], (3 * H, H), kg),
        b_ih_f=u(ks[2], (3 * H,), kg),   b_hh_f=u(ks[3], (3 * H,), kg),
        w_ih_b=u(ks[4], (3 * H, E), kg), w_hh_b=u(ks[5], (3 * H, H), kg),
        b_ih_b=u(ks[6], (3 * H,), kg),   b_hh_b=u(ks[7], (3 * H,), kg),
        w_fc=u(ks[8], (O, 2 * H), kf),   b_fc=u(ks[9], (O,), kf),
    )


def reference_forward(text, params):
    """Pure-JAX reference (same math as torch nn.GRU + Linear)."""
    if text.ndim == 2:
        text = text[None]
    B, T, E = text.shape
    H = params["w_hh_f"].shape[1]

    def gru_dir(wih, whh, bih, bhh, reverse):
        def cell(h, x_t):
            g_x = x_t @ wih.T + bih
            g_h = h @ whh.T + bhh
            r = jax.nn.sigmoid(g_x[:, :H] + g_h[:, :H])
            z = jax.nn.sigmoid(g_x[:, H:2 * H] + g_h[:, H:2 * H])
            n = jnp.tanh(g_x[:, 2 * H:] + r * g_h[:, 2 * H:])
            h_new = (1.0 - z) * n + z * h
            return h_new, h_new
        xs = jnp.transpose(text, (1, 0, 2)).astype(jnp.float32)
        if reverse:
            xs = xs[::-1]
        _, hs = lax.scan(cell, jnp.zeros((B, H), jnp.float32), xs)
        if reverse:
            hs = hs[::-1]
        return jnp.transpose(hs, (1, 0, 2))

    h_f = gru_dir(params["w_ih_f"], params["w_hh_f"],
                  params["b_ih_f"], params["b_hh_f"], reverse=False)
    h_b = gru_dir(params["w_ih_b"], params["w_hh_b"],
                  params["b_ih_b"], params["b_hh_b"], reverse=True)
    h = jax.nn.relu(jnp.concatenate([h_f, h_b], axis=-1))
    return h @ params["w_fc"].T + params["b_fc"]


if __name__ == "__main__":
    # Small shapes consistent with the module: batch=2, seq=8, embed=32, hidden=32, out=1
    B, T, E, H, O = 2, 8, 32, 32, 1
    key = jax.random.PRNGKey(0)
    pkey, xkey = jax.random.split(key)
    params = init_params(pkey, embedding_dim=E, hidden_size=H, output_dim=O)
    x = jax.random.normal(xkey, (B, T, E), jnp.float32)

    fwd = jax.jit(toxic_segmenter_forward, static_argnames=("use_bf16_matmul",))
    out = jax.block_until_ready(fwd(x, params))
    assert out.shape == (B, T, O)

    ref = reference_forward(x, params)
    np.testing.assert_allclose(np.asarray(out), np.asarray(ref), rtol=1e-4, atol=1e-4)

    print("KERNEL_OK")
</pallas_src>

<mosaic_0001>
module attributes {stable_mosaic.version = 11 : i64} {
  func.func @_bigru_fc_kernel(%arg0: memref<8x8x32xf32, #tpu.memory_space<vmem>>, %arg1: memref<32x192xf32, #tpu.memory_space<vmem>>, %arg2: memref<64x192xf32, #tpu.memory_space<vmem>>, %arg3: memref<1x192xf32, #tpu.memory_space<vmem>>, %arg4: memref<1x64xf32, #tpu.memory_space<vmem>>, %arg5: memref<64x128xf32, #tpu.memory_space<vmem>>, %arg6: memref<1x128xf32, #tpu.memory_space<vmem>>, %arg7: memref<8x8x128xf32, #tpu.memory_space<vmem>>, %arg8: memref<8x8x192xf32, #tpu.memory_space<vmem>>, %arg9: memref<8x8x32xf32, #tpu.memory_space<vmem>>, %arg10: memref<8x8x32xf32, #tpu.memory_space<vmem>>) attributes {dimension_semantics = [], scalar_prefetch = 0 : i64, scratch_operands = 3 : i64, tpu.core_type = #tpu.core_type<tc>} {
    %c0 = arith.constant 0 : index
    %c0_0 = arith.constant 0 : index
    %c0_1 = arith.constant 0 : index
    %0 = vector.load %arg0[%c0, %c0_0, %c0_1] : memref<8x8x32xf32, #tpu.memory_space<vmem>>, vector<8x8x32xf32>
    %1 = vector.shape_cast %0 : vector<8x8x32xf32> to vector<64x32xf32>
    %c0_2 = arith.constant 0 : index
    %c0_3 = arith.constant 0 : index
    %2 = vector.load %arg1[%c0_2, %c0_3] : memref<32x192xf32, #tpu.memory_space<vmem>>, vector<32x192xf32>
    %cst = arith.constant dense<0.000000e+00> : vector<64x192xf32>
    %3 = tpu.matmul %1, %2, %cst {dimension_numbers = #tpu.dot_dimension_numbers<[1], [0], [0], [1], [0, 0, 1, 1], [], []>} : vector<64x32xf32>, vector<32x192xf32>, vector<64x192xf32> -> vector<64x192xf32>
    %c0_4 = arith.constant 0 : index
    %c0_5 = arith.constant 0 : index
    %4 = vector.load %arg3[%c0_4, %c0_5] : memref<1x192xf32, #tpu.memory_space<vmem>>, vector<1x192xf32>
    %5 = vector.broadcast %4 : vector<1x192xf32> to vector<64x192xf32>
    %6 = arith.addf %3, %5 : vector<64x192xf32>
    %7 = vector.shape_cast %6 : vector<64x192xf32> to vector<8x8x192xf32>
    %c0_6 = arith.constant 0 : index
    %c0_7 = arith.constant 0 : index
    %c0_8 = arith.constant 0 : index
    %8 = vector.load %arg8[%c0_6, %c0_7, %c0_8] : memref<8x8x192xf32, #tpu.memory_space<vmem>>, vector<8x8x192xf32>
    tpu.vector_store %arg8[%c0_6, %c0_7, %c0_8], %7 {strides = array<i32>} : memref<8x8x192xf32, #tpu.memory_space<vmem>>, vector<8x8x192xf32>,
    %c0_9 = arith.constant 0 : index
    %c0_10 = arith.constant 0 : index
    %9 = vector.load %arg2[%c0_9, %c0_10] : memref<64x192xf32, #tpu.memory_space<vmem>>, vector<64x192xf32>
    %c0_11 = arith.constant 0 : index
    %c0_12 = arith.constant 0 : index
    %10 = vector.load %arg4[%c0_11, %c0_12] : memref<1x64xf32, #tpu.memory_space<vmem>>, vector<1x64xf32>
    %cst_13 = arith.constant 0.000000e+00 : f32
    %11 = vector.broadcast %cst_13 : f32 to vector<8x64xf32>
    %cst_14 = arith.constant dense<0.000000e+00> : vector<8x192xf32>
    %12 = tpu.matmul %11, %9, %cst_14 {dimension_numbers = #tpu.dot_dimension_numbers<[1], [0], [0], [1], [0, 0, 1, 1], [], []>} : vector<8x64xf32>, vector<64x192xf32>, vector<8x192xf32> -> vector<8x192xf32>
    %c0_15 = arith.constant 0 : index
    %c0_16 = arith.constant 0 : index
    %c0_17 = arith.constant 0 : index
    %13 = vector.load %arg8[%c0_15, %c0_16, %c0_17] : memref<8x8x192xf32, #tpu.memory_space<vmem>>, vector<1x8x192xf32>
    %14 = vector.shape_cast %13 : vector<1x8x192xf32> to vector<8x192xf32>
    %c7 = arith.constant 7 : index
    %c0_18 = arith.constant 0 : index
    %c0_19 = arith.constant 0 : index
    %15 = vector.load %arg8[%c7, %c0_18, %c0_19] : memref<8x8x192xf32, #tpu.memory_space<vmem>>, vector<1x8x192xf32>
    %16 = vector.shape_cast %15 : vector<1x8x192xf32> to vector<8x192xf32>
    %17 = vector.extract_strided_slice %14 {offsets = [0, 0], sizes = [8, 32], strides = [1, 1]} : vector<8x192xf32> to vector<8x32xf32>
    %18 = vector.extract_strided_slice %12 {offsets = [0, 0], sizes = [8, 32], strides = [1, 1]} : vector<8x192xf32> to vector<8x32xf32>
    %19 = arith.addf %17, %18 : vector<8x32xf32>
    %20 = arith.negf %19 : vector<8x32xf32>
    %21 = math.exp %20 : vector<8x32xf32>
    %cst_20 = arith.constant 1.000000e+00 : f32
    %22 = vector.broadcast %cst_20 : f32 to vector<8x32xf32>
    %23 = arith.addf %22, %21 : vector<8x32xf32>
    %24 = arith.divf %22, %23 : vector<8x32xf32>
    %25 = vector.extract_strided_slice %14 {offsets = [0, 32], sizes = [8, 32], strides = [1, 1]} : vector<8x192xf32> to vector<8x32xf32>
    %26 = vector.extract_strided_slice %12 {offsets = [0, 32], sizes = [8, 32], strides = [1, 1]} : vector<8x192xf32> to vector<8x32xf32>
    %27 = arith.addf %25, %26 : vector<8x32xf32>
    %28 = arith.negf %27 : vector<8x32xf32>
    %29 = math.exp %28 : vector<8x32xf32>
    %cst_21 = arith.constant 1.000000e+00 : f32
    %30 = vector.broadcast %cst_21 : f32 to vector<8x32xf32>
    %31 = arith.addf %30, %29 : vector<8x32xf32>
    %32 = arith.divf %30, %31 : vector<8x32xf32>
    %33 = vector.extract_strided_slice %14 {offsets = [0, 64], sizes = [8, 32], strides = [1, 1]} : vector<8x192xf32> to vector<8x32xf32>
    %34 = vector.extract_strided_slice %12 {offsets = [0, 64], sizes = [8, 32], strides = [1, 1]} : vector<8x192xf32> to vector<8x32xf32>
    %35 = vector.extract_strided_slice %10 {offsets = [0, 0], sizes = [1, 32], strides = [1, 1]} : vector<1x64xf32> to vector<1x32xf32>
    %36 = vector.broadcast %35 : vector<1x32xf32> to vector<8x32xf32>
    %37 = arith.addf %34, %36 : vector<8x32xf32>
    %38 = arith.mulf %24, %37 : vector<8x32xf32>
    %39 = arith.addf %33, %38 : vector<8x32xf32>
    %40 = math.tanh %39 : vector<8x32xf32>
    %cst_22 = arith.constant 1.000000e+00 : f32
    %41 = vector.broadcast %cst_22 : f32 to vector<8x32xf32>
    %42 = arith.subf %41, %32 : vector<8x32xf32>
    %43 = arith.mulf %42, %40 : vector<8x32xf32>
    %44 = vector.extract_strided_slice %11 {offsets = [0, 0], sizes = [8, 32], strides = [1, 1]} : vector<8x64xf32> to vector<8x32xf32>
    %45 = arith.mulf %32, %44 : vector<8x32xf32>
    %46 = arith.addf %43, %45 : vector<8x32xf32>
    %47 = vector.extract_strided_slice %16 {offsets = [0, 96], sizes = [8, 32], strides = [1, 1]} : vector<8x192xf32> to vector<8x32xf32>
    %48 = vector.extract_strided_slice %12 {offsets = [0, 96], sizes = [8, 32], strides = [1, 1]} : vector<8x192xf32> to vector<8x32xf32>
    %49 = arith.addf %47, %48 : vector<8x32xf32>
    %50 = arith.negf %49 : vector<8x32xf32>
    %51 = math.exp %50 : vector<8x32xf32>
    %cst_23 = arith.constant 1.000000e+00 : f32
    %52 = vector.broadcast %cst_23 : f32 to vector<8x32xf32>
    %53 = arith.addf %52, %51 : vector<8x32xf32>
    %54 = arith.divf %52, %53 : vector<8x32xf32>
    %55 = vector.extract_strided_slice %16 {offsets = [0, 128], sizes = [8, 32], strides = [1, 1]} : vector<8x192xf32> to vector<8x32xf32>
    %56 = vector.extract_strided_slice %12 {offsets = [0, 128], sizes = [8, 32], strides = [1, 1]} : vector<8x192xf32> to vector<8x32xf32>
    %57 = arith.addf %55, %56 : vector<8x32xf32>
    %58 = arith.negf %57 : vector<8x32xf32>
    %59 = math.exp %58 : vector<8x32xf32>
    %cst_24 = arith.constant 1.000000e+00 : f32
    %60 = vector.broadcast %cst_24 : f32 to vector<8x32xf32>
    %61 = arith.addf %60, %59 : vector<8x32xf32>
    %62 = arith.divf %60, %61 : vector<8x32xf32>
    %63 = vector.extract_strided_slice %16 {offsets = [0, 160], sizes = [8, 32], strides = [1, 1]} : vector<8x192xf32> to vector<8x32xf32>
    %64 = vector.extract_strided_slice %12 {offsets = [0, 160], sizes = [8, 32], strides = [1, 1]} : vector<8x192xf32> to vector<8x32xf32>
    %65 = vector.extract_strided_slice %10 {offsets = [0, 32], sizes = [1, 32], strides = [1, 1]} : vector<1x64xf32> to vector<1x32xf32>
    %66 = vector.broadcast %65 : vector<1x32xf32> to vector<8x32xf32>
    %67 = arith.addf %64, %66 : vector<8x32xf32>
    %68 = arith.mulf %54, %67 : vector<8x32xf32>
    %69 = arith.addf %63, %68 : vector<8x32xf32>
    %70 = math.tanh %69 : vector<8x32xf32>
    %cst_25 = arith.constant 1.000000e+00 : f32
    %71 = vector.broadcast %cst_25 : f32 to vector<8x32xf32>
    %72 = arith.subf %71, %62 : vector<8x32xf32>
    %73 = arith.mulf %72, %70 : vector<8x32xf32>
    %74 = vector.extract_strided_slice %11 {offsets = [0, 32], sizes = [8, 32], strides = [1, 1]} : vector<8x64xf32> to vector<8x32xf32>
    %75 = arith.mulf %62, %74 : vector<8x32xf32>
    %76 = arith.addf %73, %75 : vector<8x32xf32>
    %c0_26 = arith.constant 0 : index
    %c0_27 = arith.constant 0 : index
    %c0_28 = arith.constant 0 : index
    %77 = vector.load %arg9[%c0_26, %c0_27, %c0_28] : memref<8x8x32xf32, #tpu.memory_space<vmem>>, vector<1x8x32xf32>
    %78 = vector.shape_cast %77 : vector<1x8x32xf32> to vector<8x32xf32>
    %79 = vector.shape_cast %46 : vector<8x32xf32> to vector<1x8x32xf32>
    tpu.vector_store %arg9[%c0_26, %c0_27, %c0_28], %79 {strides = array<i32>} : memref<8x8x32xf32, #tpu.memory_space<vmem>>, vector<1x8x32xf32>,
    %c7_29 = arith.constant 7 : index
    %c0_30 = arith.constant 0 : index
    %c0_31 = arith.constant 0 : index
    %80 = vector.load %arg10[%c7_29, %c0_30, %c0_31] : memref<8x8x32xf32, #tpu.memory_space<vmem>>, vector<1x8x32xf32>
    %81 = vector.shape_cast %80 : vector<1x8x32xf32> to vector<8x32xf32>
    %82 = vector.shape_cast %76 : vector<8x32xf32> to vector<1x8x32xf32>
    tpu.vector_store %arg10[%c7_29, %c0_30, %c0_31], %82 {strides = array<i32>} : memref<8x8x32xf32, #tpu.memory_space<vmem>>, vector<1x8x32xf32>,
    %83 = tpu.concatenate %46, %76 in 1 : vector<8x32xf32>, vector<8x32xf32> -> vector<8x64xf32>
    %cst_32 = arith.constant dense<0.000000e+00> : vector<8x192xf32>
    %84 = tpu.matmul %83, %9, %cst_32 {dimension_numbers = #tpu.dot_dimension_numbers<[1], [0], [0], [1], [0, 0, 1, 1], [], []>} : vector<8x64xf32>, vector<64x192xf32>, vector<8x192xf32> -> vector<8x192xf32>
    %c1 = arith.constant 1 : index
    %c0_33 = arith.constant 0 : index
    %c0_34 = arith.constant 0 : index
    %85 = vector.load %arg8[%c1, %c0_33, %c0_34] : memref<8x8x192xf32, #tpu.memory_space<vmem>>, vector<1x8x192xf32>
    %86 = vector.shape_cast %85 : vector<1x8x192xf32> to vector<8x192xf32>
    %c6 = arith.constant 6 : index
    %c0_35 = arith.constant 0 : index
    %c0_36 = arith.constant 0 : index
    %87 = vector.load %arg8[%c6, %c0_35, %c0_36] : memref<8x8x192xf32, #tpu.memory_space<vmem>>, vector<1x8x192xf32>
    %88 = vector.shape_cast %87 : vector<1x8x192xf32> to vector<8x192xf32>
    %89 = vector.extract_strided_slice %86 {offsets = [0, 0], sizes = [8, 32], strides = [1, 1]} : vector<8x192xf32> to vector<8x32xf32>
    %90 = vector.extract_strided_slice %84 {offsets = [0, 0], sizes = [8, 32], strides = [1, 1]} : vector<8x192xf32> to vector<8x32xf32>
    %91 = arith.addf %89, %90 : vector<8x32xf32>
    %92 = arith.negf %91 : vector<8x32xf32>
    %93 = math.exp %92 : vector<8x32xf32>
    %cst_37 = arith.constant 1.000000e+00 : f32
    %94 = vector.broadcast %cst_37 : f32 to vector<8x32xf32>
    %95 = arith.addf %94, %93 : vector<8x32xf32>
    %96 = arith.divf %94, %95 : vector<8x32xf32>
    %97 = vector.extract_strided_slice %86 {offsets = [0, 32], sizes = [8, 32], strides = [1, 1]} : vector<8x192xf32> to vector<8x32xf32>
    %98 = vector.extract_strided_slice %84 {offsets = [0, 32], sizes = [8, 32], strides = [1, 1]} : vector<8x192xf32> to vector<8x32xf32>
    %99 = arith.addf %97, %98 : vector<8x32xf32>
    %100 = arith.negf %99 : vector<8x32xf32>
    %101 = math.exp %100 : vector<8x32xf32>
    %cst_38 = arith.constant 1.000000e+00 : f32
    %102 = vector.broadcast %cst_38 : f32 to vector<8x32xf32>
    %103 = arith.addf %102, %101 : vector<8x32xf32>
    %104 = arith.divf %102, %103 : vector<8x32xf32>
    %105 = vector.extract_strided_slice %86 {offsets = [0, 64], sizes = [8, 32], strides = [1, 1]} : vector<8x192xf32> to vector<8x32xf32>
    %106 = vector.extract_strided_slice %84 {offsets = [0, 64], sizes = [8, 32], strides = [1, 1]} : vector<8x192xf32> to vector<8x32xf32>
    %107 = vector.extract_strided_slice %10 {offsets = [0, 0], sizes = [1, 32], strides = [1, 1]} : vector<1x64xf32> to vector<1x32xf32>
    %108 = vector.broadcast %107 : vector<1x32xf32> to vector<8x32xf32>
    %109 = arith.addf %106, %108 : vector<8x32xf32>
    %110 = arith.mulf %96, %109 : vector<8x32xf32>
    %111 = arith.addf %105, %110 : vector<8x32xf32>
    %112 = math.tanh %111 : vector<8x32xf32>
    %cst_39 = arith.constant 1.000000e+00 : f32
    %113 = vector.broadcast %cst_39 : f32 to vector<8x32xf32>
    %114 = arith.subf %113, %104 : vector<8x32xf32>
    %115 = arith.mulf %114, %112 : vector<8x32xf32>
    %116 = vector.extract_strided_slice %83 {offsets = [0, 0], sizes = [8, 32], strides = [1, 1]} : vector<8x64xf32> to vector<8x32xf32>
    %117 = arith.mulf %104, %116 : vector<8x32xf32>
    %118 = arith.addf %115, %117 : vector<8x32xf32>
    %119 = vector.extract_strided_slice %88 {offsets = [0, 96], sizes = [8, 32], strides = [1, 1]} : vector<8x192xf32> to vector<8x32xf32>
    %120 = vector.extract_strided_slice %84 {offsets = [0, 96], sizes = [8, 32], strides = [1, 1]} : vector<8x192xf32> to vector<8x32xf32>
    %121 = arith.addf %119, %120 : vector<8x32xf32>
    %122 = arith.negf %121 : vector<8x32xf32>
    %123 = math.exp %122 : vector<8x32xf32>
    %cst_40 = arith.constant 1.000000e+00 : f32
    %124 = vector.broadcast %cst_40 : f32 to vector<8x32xf32>
    %125 = arith.addf %124, %123 : vector<8x32xf32>
    %126 = arith.divf %124, %125 : vector<8x32xf32>
    %127 = vector.extract_strided_slice %88 {offsets = [0, 128], sizes = [8, 32], strides = [1, 1]} : vector<8x192xf32> to vector<8x32xf32>
    %128 = vector.extract_strided_slice %84 {offsets = [0, 128], sizes = [8, 32], strides = [1, 1]} : vector<8x192xf32> to vector<8x32xf32>
    %129 = arith.addf %127, %128 : vector<8x32xf32>
    %130 = arith.negf %129 : vector<8x32xf32>
    %131 = math.exp %130 : vector<8x32xf32>
    %cst_41 = arith.constant 1.000000e+00 : f32
    %132 = vector.broadcast %cst_41 : f32 to vector<8x32xf32>
    %133 = arith.addf %132, %131 : vector<8x32xf32>
    %134 = arith.divf %132, %133 : vector<8x32xf32>
    %135 = vector.extract_strided_slice %88 {offsets = [0, 160], sizes = [8, 32], strides = [1, 1]} : vector<8x192xf32> to vector<8x32xf32>
    %136 = vector.extract_strided_slice %84 {offsets = [0, 160], sizes = [8, 32], strides = [1, 1]} : vector<8x192xf32> to vector<8x32xf32>
    %137 = vector.extract_strided_slice %10 {offsets = [0, 32], sizes = [1, 32], strides = [1, 1]} : vector<1x64xf32> to vector<1x32xf32>
    %138 = vector.broadcast %137 : vector<1x32xf32> to vector<8x32xf32>
    %139 = arith.addf %136, %138 : vector<8x32xf32>
    %140 = arith.mulf %126, %139 : vector<8x32xf32>
    %141 = arith.addf %135, %140 : vector<8x32xf32>
    %142 = math.tanh %141 : vector<8x32xf32>
    %cst_42 = arith.constant 1.000000e+00 : f32
    %143 = vector.broadcast %cst_42 : f32 to vector<8x32xf32>
    %144 = arith.subf %143, %134 : vector<8x32xf32>
    %145 = arith.mulf %144, %142 : vector<8x32xf32>
    %146 = vector.extract_strided_slice %83 {offsets = [0, 32], sizes = [8, 32], strides = [1, 1]} : vector<8x64xf32> to vector<8x32xf32>
    %147 = arith.mulf %134, %146 : vector<8x32xf32>
    %148 = arith.addf %145, %147 : vector<8x32xf32>
    %c1_43 = arith.constant 1 : index
    %c0_44 = arith.constant 0 : index
    %c0_45 = arith.constant 0 : index
    %149 = vector.load %arg9[%c1_43, %c0_44, %c0_45] : memref<8x8x32xf32, #tpu.memory_space<vmem>>, vector<1x8x32xf32>
    %150 = vector.shape_cast %149 : vector<1x8x32xf32> to vector<8x32xf32>
    %151 = vector.shape_cast %118 : vector<8x32xf32> to vector<1x8x32xf32>
    tpu.vector_store %arg9[%c1_43, %c0_44, %c0_45], %151 {strides = array<i32>} : memref<8x8x32xf32, #tpu.memory_space<vmem>>, vector<1x8x32xf32>,
    %c6_46 = arith.constant 6 : index
    %c0_47 = arith.constant 0 : index
    %c0_48 = arith.constant 0 : index
    %152 = vector.load %arg10[%c6_46, %c0_47, %c0_48] : memref<8x8x32xf32, #tpu.memory_space<vmem>>, vector<1x8x32xf32>
    %153 = vector.shape_cast %152 : vector<1x8x32xf32> to vector<8x32xf32>
    %154 = vector.shape_cast %148 : vector<8x32xf32> to vector<1x8x32xf32>
    tpu.vector_store %arg10[%c6_46, %c0_47, %c0_48], %154 {strides = array<i32>} : memref<8x8x32xf32, #tpu.memory_space<vmem>>, vector<1x8x32xf32>,
    %155 = tpu.concatenate %118, %148 in 1 : vector<8x32xf32>, vector<8x32xf32> -> vector<8x64xf32>
    %cst_49 = arith.constant dense<0.000000e+00> : vector<8x192xf32>
    %156 = tpu.matmul %155, %9, %cst_49 {dimension_numbers = #tpu.dot_dimension_numbers<[1], [0], [0], [1], [0, 0, 1, 1], [], []>} : vector<8x64xf32>, vector<64x192xf32>, vector<8x192xf32> -> vector<8x192xf32>
    %c2 = arith.constant 2 : index
    %c0_50 = arith.constant 0 : index
    %c0_51 = arith.constant 0 : index
    %157 = vector.load %arg8[%c2, %c0_50, %c0_51] : memref<8x8x192xf32, #tpu.memory_space<vmem>>, vector<1x8x192xf32>
    %158 = vector.shape_cast %157 : vector<1x8x192xf32> to vector<8x192xf32>
    %c5 = arith.constant 5 : index
    %c0_52 = arith.constant 0 : index
    %c0_53 = arith.constant 0 : index
    %159 = vector.load %arg8[%c5, %c0_52, %c0_53] : memref<8x8x192xf32, #tpu.memory_space<vmem>>, vector<1x8x192xf32>
    %160 = vector.shape_cast %159 : vector<1x8x192xf32> to vector<8x192xf32>
    %161 = vector.extract_strided_slice %158 {offsets = [0, 0], sizes = [8, 32], strides = [1, 1]} : vector<8x192xf32> to vector<8x32xf32>
    %162 = vector.extract_strided_slice %156 {offsets = [0, 0], sizes = [8, 32], strides = [1, 1]} : vector<8x192xf32> to vector<8x32xf32>
    %163 = arith.addf %161, %162 : vector<8x32xf32>
    %164 = arith.negf %163 : vector<8x32xf32>
    %165 = math.exp %164 : vector<8x32xf32>
    %cst_54 = arith.constant 1.000000e+00 : f32
    %166 = vector.broadcast %cst_54 : f32 to vector<8x32xf32>
    %167 = arith.addf %166, %165 : vector<8x32xf32>
    %168 = arith.divf %166, %167 : vector<8x32xf32>
    %169 = vector.extract_strided_slice %158 {offsets = [0, 32], sizes = [8, 32], strides = [1, 1]} : vector<8x192xf32> to vector<8x32xf32>
    %170 = vector.extract_strided_slice %156 {offsets = [0, 32], sizes = [8, 32], strides = [1, 1]} : vector<8x192xf32> to vector<8x32xf32>
    %171 = arith.addf %169, %170 : vector<8x32xf32>
    %172 = arith.negf %171 : vector<8x32xf32>
    %173 = math.exp %172 : vector<8x32xf32>
    %cst_55 = arith.constant 1.000000e+00 : f32
    %174 = vector.broadcast %cst_55 : f32 to vector<8x32xf32>
    %175 = arith.addf %174, %173 : vector<8x32xf32>
    %176 = arith.divf %174, %175 : vector<8x32xf32>
    %177 = vector.extract_strided_slice %158 {offsets = [0, 64], sizes = [8, 32], strides = [1, 1]} : vector<8x192xf32> to vector<8x32xf32>
    %178 = vector.extract_strided_slice %156 {offsets = [0, 64], sizes = [8, 32], strides = [1, 1]} : vector<8x192xf32> to vector<8x32xf32>
    %179 = vector.extract_strided_slice %10 {offsets = [0, 0], sizes = [1, 32], strides = [1, 1]} : vector<1x64xf32> to vector<1x32xf32>
    %180 = vector.broadcast %179 : vector<1x32xf32> to vector<8x32xf32>
    %181 = arith.addf %178, %180 : vector<8x32xf32>
    %182 = arith.mulf %168, %181 : vector<8x32xf32>
    %183 = arith.addf %177, %182 : vector<8x32xf32>
    %184 = math.tanh %183 : vector<8x32xf32>
    %cst_56 = arith.constant 1.000000e+00 : f32
    %185 = vector.broadcast %cst_56 : f32 to vector<8x32xf32>
    %186 = arith.subf %185, %176 : vector<8x32xf32>
    %187 = arith.mulf %186, %184 : vector<8x32xf32>
    %188 = vector.extract_strided_slice %155 {offsets = [0, 0], sizes = [8, 32], strides = [1, 1]} : vector<8x64xf32> to vector<8x32xf32>
    %189 = arith.mulf %176, %188 : vector<8x32xf32>
    %190 = arith.addf %187, %189 : vector<8x32xf32>
    %191 = vector.extract_strided_slice %160 {offsets = [0, 96], sizes = [8, 32], strides = [1, 1]} : vector<8x192xf32> to vector<8x32xf32>
    %192 = vector.extract_strided_slice %156 {offsets = [0, 96], sizes = [8, 32], strides = [1, 1]} : vector<8x192xf32> to vector<8x32xf32>
    %193 = arith.addf %191, %192 : vector<8x32xf32>
    %194 = arith.negf %193 : vector<8x32xf32>
    %195 = math.exp %194 : vector<8x32xf32>
    %cst_57 = arith.constant 1.000000e+00 : f32
    %196 = vector.broadcast %cst_57 : f32 to vector<8x32xf32>
    %197 = arith.addf %196, %195 : vector<8x32xf32>
    %198 = arith.divf %196, %197 : vector<8x32xf32>
    %199 = vector.extract_strided_slice %160 {offsets = [0, 128], sizes = [8, 32], strides = [1, 1]} : vector<8x192xf32> to vector<8x32xf32>
    %200 = vector.extract_strided_slice %156 {offsets = [0, 128], sizes = [8, 32], strides = [1, 1]} : vector<8x192xf32> to vector<8x32xf32>
    %201 = arith.addf %199, %200 : vector<8x32xf32>
    %202 = arith.negf %201 : vector<8x32xf32>
    %203 = math.exp %202 : vector<8x32xf32>
    %cst_58 = arith.constant 1.000000e+00 : f32
    %204 = vector.broadcast %cst_58 : f32 to vector<8x32xf32>
    %205 = arith.addf %204, %203 : vector<8x32xf32>
    %206 = arith.divf %204, %205 : vector<8x32xf32>
    %207 = vector.extract_strided_slice %160 {offsets = [0, 160], sizes = [8, 32], strides = [1, 1]} : vector<8x192xf32> to vector<8x32xf32>
    %208 = vector.extract_strided_slice %156 {offsets = [0, 160], sizes = [8, 32], strides = [1, 1]} : vector<8x192xf32> to vector<8x32xf32>
    %209 = vector.extract_strided_slice %10 {offsets = [0, 32], sizes = [1, 32], strides = [1, 1]} : vector<1x64xf32> to vector<1x32xf32>
    %210 = vector.broadcast %209 : vector<1x32xf32> to vector<8x32xf32>
    %211 = arith.addf %208, %210 : vector<8x32xf32>
    %212 = arith.mulf %198, %211 : vector<8x32xf32>
    %213 = arith.addf %207, %212 : vector<8x32xf32>
    %214 = math.tanh %213 : vector<8x32xf32>
    %cst_59 = arith.constant 1.000000e+00 : f32
    %215 = vector.broadcast %cst_59 : f32 to vector<8x32xf32>
    %216 = arith.subf %215, %206 : vector<8x32xf32>
    %217 = arith.mulf %216, %214 : vector<8x32xf32>
    %218 = vector.extract_strided_slice %155 {offsets = [0, 32], sizes = [8, 32], strides = [1, 1]} : vector<8x64xf32> to vector<8x32xf32>
    %219 = arith.mulf %206, %218 : vector<8x32xf32>
    %220 = arith.addf %217, %219 : vector<8x32xf32>
    %c2_60 = arith.constant 2 : index
    %c0_61 = arith.constant 0 : index
    %c0_62 = arith.constant 0 : index
    %221 = vector.load %arg9[%c2_60, %c0_61, %c0_62] : memref<8x8x32xf32, #tpu.memory_space<vmem>>, vector<1x8x32xf32>
    %222 = vector.shape_cast %221 : vector<1x8x32xf32> to vector<8x32xf32>
    %223 = vector.shape_cast %190 : vector<8x32xf32> to vector<1x8x32xf32>
    tpu.vector_store %arg9[%c2_60, %c0_61, %c0_62], %223 {strides = array<i32>} : memref<8x8x32xf32, #tpu.memory_space<vmem>>, vector<1x8x32xf32>,
    %c5_63 = arith.constant 5 : index
    %c0_64 = arith.constant 0 : index
    %c0_65 = arith.constant 0 : index
    %224 = vector.load %arg10[%c5_63, %c0_64, %c0_65] : memref<8x8x32xf32, #tpu.memory_space<vmem>>, vector<1x8x32xf32>
    %225 = vector.shape_cast %224 : vector<1x8x32xf32> to vector<8x32xf32>
    %226 = vector.shape_cast %220 : vector<8x32xf32> to vector<1x8x32xf32>
    tpu.vector_store %arg10[%c5_63, %c0_64, %c0_65], %226 {strides = array<i32>} : memref<8x8x32xf32, #tpu.memory_space<vmem>>, vector<1x8x32xf32>,
    %227 = tpu.concatenate %190, %220 in 1 : vector<8x32xf32>, vector<8x32xf32> -> vector<8x64xf32>
    %cst_66 = arith.constant dense<0.000000e+00> : vector<8x192xf32>
    %228 = tpu.matmul %227, %9, %cst_66 {dimension_numbers = #tpu.dot_dimension_numbers<[1], [0], [0], [1], [0, 0, 1, 1], [], []>} : vector<8x64xf32>, vector<64x192xf32>, vector<8x192xf32> -> vector<8x192xf32>
    %c3 = arith.constant 3 : index
    %c0_67 = arith.constant 0 : index
    %c0_68 = arith.constant 0 : index
    %229 = vector.load %arg8[%c3, %c0_67, %c0_68] : memref<8x8x192xf32, #tpu.memory_space<vmem>>, vector<1x8x192xf32>
    %230 = vector.shape_cast %229 : vector<1x8x192xf32> to vector<8x192xf32>
    %c4 = arith.constant 4 : index
    %c0_69 = arith.constant 0 : index
    %c0_70 = arith.constant 0 : index
    %231 = vector.load %arg8[%c4, %c0_69, %c0_70] : memref<8x8x192xf32, #tpu.memory_space<vmem>>, vector<1x8x192xf32>
    %232 = vector.shape_cast %231 : vector<1x8x192xf32> to vector<8x192xf32>
    %233 = vector.extract_strided_slice %230 {offsets = [0, 0], sizes = [8, 32], strides = [1, 1]} : vector<8x192xf32> to vector<8x32xf32>
    %234 = vector.extract_strided_slice %228 {offsets = [0, 0], sizes = [8, 32], strides = [1, 1]} : vector<8x192xf32> to vector<8x32xf32>
    %235 = arith.addf %233, %234 : vector<8x32xf32>
    %236 = arith.negf %235 : vector<8x32xf32>
    %237 = math.exp %236 : vector<8x32xf32>
    %cst_71 = arith.constant 1.000000e+00 : f32
    %238 = vector.broadcast %cst_71 : f32 to vector<8x32xf32>
    %239 = arith.addf %238, %237 : vector<8x32xf32>
    %240 = arith.divf %238, %239 : vector<8x32xf32>
    %241 = vector.extract_strided_slice %230 {offsets = [0, 32], sizes = [8, 32], strides = [1, 1]} : vector<8x192xf32> to vector<8x32xf32>
    %242 = vector.extract_strided_slice %228 {offsets = [0, 32], sizes = [8, 32], strides = [1, 1]} : vector<8x192xf32> to vector<8x32xf32>
    %243 = arith.addf %241, %242 : vector<8x32xf32>
    %244 = arith.negf %243 : vector<8x32xf32>
    %245 = math.exp %244 : vector<8x32xf32>
    %cst_72 = arith.constant 1.000000e+00 : f32
    %246 = vector.broadcast %cst_72 : f32 to vector<8x32xf32>
    %247 = arith.addf %246, %245 : vector<8x32xf32>
    %248 = arith.divf %246, %247 : vector<8x32xf32>
    %249 = vector.extract_strided_slice %230 {offsets = [0, 64], sizes = [8, 32], strides = [1, 1]} : vector<8x192xf32> to vector<8x32xf32>
    %250 = vector.extract_strided_slice %228 {offsets = [0, 64], sizes = [8, 32], strides = [1, 1]} : vector<8x192xf32> to vector<8x32xf32>
    %251 = vector.extract_strided_slice %10 {offsets = [0, 0], sizes = [1, 32], strides = [1, 1]} : vector<1x64xf32> to vector<1x32xf32>
    %252 = vector.broadcast %251 : vector<1x32xf32> to vector<8x32xf32>
    %253 = arith.addf %250, %252 : vector<8x32xf32>
    %254 = arith.mulf %240, %253 : vector<8x32xf32>
    %255 = arith.addf %249, %254 : vector<8x32xf32>
    %256 = math.tanh %255 : vector<8x32xf32>
    %cst_73 = arith.constant 1.000000e+00 : f32
    %257 = vector.broadcast %cst_73 : f32 to vector<8x32xf32>
    %258 = arith.subf %257, %248 : vector<8x32xf32>
    %259 = arith.mulf %258, %256 : vector<8x32xf32>
    %260 = vector.extract_strided_slice %227 {offsets = [0, 0], sizes = [8, 32], strides = [1, 1]} : vector<8x64xf32> to vector<8x32xf32>
    %261 = arith.mulf %248, %260 : vector<8x32xf32>
    %262 = arith.addf %259, %261 : vector<8x32xf32>
    %263 = vector.extract_strided_slice %232 {offsets = [0, 96], sizes = [8, 32], strides = [1, 1]} : vector<8x192xf32> to vector<8x32xf32>
    %264 = vector.extract_strided_slice %228 {offsets = [0, 96], sizes = [8, 32], strides = [1, 1]} : vector<8x192xf32> to vector<8x32xf32>
    %265 = arith.addf %263, %264 : vector<8x32xf32>
    %266 = arith.negf %265 : vector<8x32xf32>
    %267 = math.exp %266 : vector<8x32xf32>
    %cst_74 = arith.constant 1.000000e+00 : f32
    %268 = vector.broadcast %cst_74 : f32 to vector<8x32xf32>
    %269 = arith.addf %268, %267 : vector<8x32xf32>
    %270 = arith.divf %268, %269 : vector<8x32xf32>
    %271 = vector.extract_strided_slice %232 {offsets = [0, 128], sizes = [8, 32], strides = [1, 1]} : vector<8x192xf32> to vector<8x32xf32>
    %272 = vector.extract_strided_slice %228 {offsets = [0, 128], sizes = [8, 32], strides = [1, 1]} : vector<8x192xf32> to vector<8x32xf32>
    %273 = arith.addf %271, %272 : vector<8x32xf32>
    %274 = arith.negf %273 : vector<8x32xf32>
    %275 = math.exp %274 : vector<8x32xf32>
    %cst_75 = arith.constant 1.000000e+00 : f32
    %276 = vector.broadcast %cst_75 : f32 to vector<8x32xf32>
    %277 = arith.addf %276, %275 : vector<8x32xf32>
    %278 = arith.divf %276, %277 : vector<8x32xf32>
    %279 = vector.extract_strided_slice %232 {offsets = [0, 160], sizes = [8, 32], strides = [1, 1]} : vector<8x192xf32> to vector<8x32xf32>
    %280 = vector.extract_strided_slice %228 {offsets = [0, 160], sizes = [8, 32], strides = [1, 1]} : vector<8x192xf32> to vector<8x32xf32>
    %281 = vector.extract_strided_slice %10 {offsets = [0, 32], sizes = [1, 32], strides = [1, 1]} : vector<1x64xf32> to vector<1x32xf32>
    %282 = vector.broadcast %281 : vector<1x32xf32> to vector<8x32xf32>
    %283 = arith.addf %280, %282 : vector<8x32xf32>
    %284 = arith.mulf %270, %283 : vector<8x32xf32>
    %285 = arith.addf %279, %284 : vector<8x32xf32>
    %286 = math.tanh %285 : vector<8x32xf32>
    %cst_76 = arith.constant 1.000000e+00 : f32
    %287 = vector.broadcast %cst_76 : f32 to vector<8x32xf32>
    %288 = arith.subf %287, %278 : vector<8x32xf32>
    %289 = arith.mulf %288, %286 : vector<8x32xf32>
    %290 = vector.extract_strided_slice %227 {offsets = [0, 32], sizes = [8, 32], strides = [1, 1]} : vector<8x64xf32> to vector<8x32xf32>
    %291 = arith.mulf %278, %290 : vector<8x32xf32>
    %292 = arith.addf %289, %291 : vector<8x32xf32>
    %c3_77 = arith.constant 3 : index
    %c0_78 = arith.constant 0 : index
    %c0_79 = arith.constant 0 : index
    %293 = vector.load %arg9[%c3_77, %c0_78, %c0_79] : memref<8x8x32xf32, #tpu.memory_space<vmem>>, vector<1x8x32xf32>
    %294 = vector.shape_cast %293 : vector<1x8x32xf32> to vector<8x32xf32>
    %295 = vector.shape_cast %262 : vector<8x32xf32> to vector<1x8x32xf32>
    tpu.vector_store %arg9[%c3_77, %c0_78, %c0_79], %295 {strides = array<i32>} : memref<8x8x32xf32, #tpu.memory_space<vmem>>, vector<1x8x32xf32>,
    %c4_80 = arith.constant 4 : index
    %c0_81 = arith.constant 0 : index
    %c0_82 = arith.constant 0 : index
    %296 = vector.load %arg10[%c4_80, %c0_81, %c0_82] : memref<8x8x32xf32, #tpu.memory_space<vmem>>, vector<1x8x32xf32>
    %297 = vector.shape_cast %296 : vector<1x8x32xf32> to vector<8x32xf32>
    %298 = vector.shape_cast %292 : vector<8x32xf32> to vector<1x8x32xf32>
    tpu.vector_store %arg10[%c4_80, %c0_81, %c0_82], %298 {strides = array<i32>} : memref<8x8x32xf32, #tpu.memory_space<vmem>>, vector<1x8x32xf32>,
    %299 = tpu.concatenate %262, %292 in 1 : vector<8x32xf32>, vector<8x32xf32> -> vector<8x64xf32>
    %cst_83 = arith.constant dense<0.000000e+00> : vector<8x192xf32>
    %300 = tpu.matmul %299, %9, %cst_83 {dimension_numbers = #tpu.dot_dimension_numbers<[1], [0], [0], [1], [0, 0, 1, 1], [], []>} : vector<8x64xf32>, vector<64x192xf32>, vector<8x192xf32> -> vector<8x192xf32>
    %c4_84 = arith.constant 4 : index
    %c0_85 = arith.constant 0 : index
    %c0_86 = arith.constant 0 : index
    %301 = vector.load %arg8[%c4_84, %c0_85, %c0_86] : memref<8x8x192xf32, #tpu.memory_space<vmem>>, vector<1x8x192xf32>
    %302 = vector.shape_cast %301 : vector<1x8x192xf32> to vector<8x192xf32>
    %c3_87 = arith.constant 3 : index
    %c0_88 = arith.constant 0 : index
    %c0_89 = arith.constant 0 : index
    %303 = vector.load %arg8[%c3_87, %c0_88, %c0_89] : memref<8x8x192xf32, #tpu.memory_space<vmem>>, vector<1x8x192xf32>
    %304 = vector.shape_cast %303 : vector<1x8x192xf32> to vector<8x192xf32>
    %305 = vector.extract_strided_slice %302 {offsets = [0, 0], sizes = [8, 32], strides = [1, 1]} : vector<8x192xf32> to vector<8x32xf32>
    %306 = vector.extract_strided_slice %300 {offsets = [0, 0], sizes = [8, 32], strides = [1, 1]} : vector<8x192xf32> to vector<8x32xf32>
    %307 = arith.addf %305, %306 : vector<8x32xf32>
    %308 = arith.negf %307 : vector<8x32xf32>
    %309 = math.exp %308 : vector<8x32xf32>
    %cst_90 = arith.constant 1.000000e+00 : f32
    %310 = vector.broadcast %cst_90 : f32 to vector<8x32xf32>
    %311 = arith.addf %310, %309 : vector<8x32xf32>
    %312 = arith.divf %310, %311 : vector<8x32xf32>
    %313 = vector.extract_strided_slice %302 {offsets = [0, 32], sizes = [8, 32], strides = [1, 1]} : vector<8x192xf32> to vector<8x32xf32>
    %314 = vector.extract_strided_slice %300 {offsets = [0, 32], sizes = [8, 32], strides = [1, 1]} : vector<8x192xf32> to vector<8x32xf32>
    %315 = arith.addf %313, %314 : vector<8x32xf32>
    %316 = arith.negf %315 : vector<8x32xf32>
    %317 = math.exp %316 : vector<8x32xf32>
    %cst_91 = arith.constant 1.000000e+00 : f32
    %318 = vector.broadcast %cst_91 : f32 to vector<8x32xf32>
    %319 = arith.addf %318, %317 : vector<8x32xf32>
    %320 = arith.divf %318, %319 : vector<8x32xf32>
    %321 = vector.extract_strided_slice %302 {offsets = [0, 64], sizes = [8, 32], strides = [1, 1]} : vector<8x192xf32> to vector<8x32xf32>
    %322 = vector.extract_strided_slice %300 {offsets = [0, 64], sizes = [8, 32], strides = [1, 1]} : vector<8x192xf32> to vector<8x32xf32>
    %323 = vector.extract_strided_slice %10 {offsets = [0, 0], sizes = [1, 32], strides = [1, 1]} : vector<1x64xf32> to vector<1x32xf32>
    %324 = vector.broadcast %323 : vector<1x32xf32> to vector<8x32xf32>
    %325 = arith.addf %322, %324 : vector<8x32xf32>
    %326 = arith.mulf %312, %325 : vector<8x32xf32>
    %327 = arith.addf %321, %326 : vector<8x32xf32>
    %328 = math.tanh %327 : vector<8x32xf32>
    %cst_92 = arith.constant 1.000000e+00 : f32
    %329 = vector.broadcast %cst_92 : f32 to vector<8x32xf32>
    %330 = arith.subf %329, %320 : vector<8x32xf32>
    %331 = arith.mulf %330, %328 : vector<8x32xf32>
    %332 = vector.extract_strided_slice %299 {offsets = [0, 0], sizes = [8, 32], strides = [1, 1]} : vector<8x64xf32> to vector<8x32xf32>
    %333 = arith.mulf %320, %332 : vector<8x32xf32>
    %334 = arith.addf %331, %333 : vector<8x32xf32>
    %335 = vector.extract_strided_slice %304 {offsets = [0, 96], sizes = [8, 32], strides = [1, 1]} : vector<8x192xf32> to vector<8x32xf32>
    %336 = vector.extract_strided_slice %300 {offsets = [0, 96], sizes = [8, 32], strides = [1, 1]} : vector<8x192xf32> to vector<8x32xf32>
    %337 = arith.addf %335, %336 : vector<8x32xf32>
    %338 = arith.negf %337 : vector<8x32xf32>
    %339 = math.exp %338 : vector<8x32xf32>
    %cst_93 = arith.constant 1.000000e+00 : f32
    %340 = vector.broadcast %cst_93 : f32 to vector<8x32xf32>
    %341 = arith.addf %340, %339 : vector<8x32xf32>
    %342 = arith.divf %340, %341 : vector<8x32xf32>
    %343 = vector.extract_strided_slice %304 {offsets = [0, 128], sizes = [8, 32], strides = [1, 1]} : vector<8x192xf32> to vector<8x32xf32>
    %344 = vector.extract_strided_slice %300 {offsets = [0, 128], sizes = [8, 32], strides = [1, 1]} : vector<8x192xf32> to vector<8x32xf32>
    %345 = arith.addf %343, %344 : vector<8x32xf32>
    %346 = arith.negf %345 : vector<8x32xf32>
    %347 = math.exp %346 : vector<8x32xf32>
    %cst_94 = arith.constant 1.000000e+00 : f32
    %348 = vector.broadcast %cst_94 : f32 to vector<8x32xf32>
    %349 = arith.addf %348, %347 : vector<8x32xf32>
    %350 = arith.divf %348, %349 : vector<8x32xf32>
    %351 = vector.extract_strided_slice %304 {offsets = [0, 160], sizes = [8, 32], strides = [1, 1]} : vector<8x192xf32> to vector<8x32xf32>
    %352 = vector.extract_strided_slice %300 {offsets = [0, 160], sizes = [8, 32], strides = [1, 1]} : vector<8x192xf32> to vector<8x32xf32>
    %353 = vector.extract_strided_slice %10 {offsets = [0, 32], sizes = [1, 32], strides = [1, 1]} : vector<1x64xf32> to vector<1x32xf32>
    %354 = vector.broadcast %353 : vector<1x32xf32> to vector<8x32xf32>
    %355 = arith.addf %352, %354 : vector<8x32xf32>
    %356 = arith.mulf %342, %355 : vector<8x32xf32>
    %357 = arith.addf %351, %356 : vector<8x32xf32>
    %358 = math.tanh %357 : vector<8x32xf32>
    %cst_95 = arith.constant 1.000000e+00 : f32
    %359 = vector.broadcast %cst_95 : f32 to vector<8x32xf32>
    %360 = arith.subf %359, %350 : vector<8x32xf32>
    %361 = arith.mulf %360, %358 : vector<8x32xf32>
    %362 = vector.extract_strided_slice %299 {offsets = [0, 32], sizes = [8, 32], strides = [1, 1]} : vector<8x64xf32> to vector<8x32xf32>
    %363 = arith.mulf %350, %362 : vector<8x32xf32>
    %364 = arith.addf %361, %363 : vector<8x32xf32>
    %c4_96 = arith.constant 4 : index
    %c0_97 = arith.constant 0 : index
    %c0_98 = arith.constant 0 : index
    %365 = vector.load %arg9[%c4_96, %c0_97, %c0_98] : memref<8x8x32xf32, #tpu.memory_space<vmem>>, vector<1x8x32xf32>
    %366 = vector.shape_cast %365 : vector<1x8x32xf32> to vector<8x32xf32>
    %367 = vector.shape_cast %334 : vector<8x32xf32> to vector<1x8x32xf32>
    tpu.vector_store %arg9[%c4_96, %c0_97, %c0_98], %367 {strides = array<i32>} : memref<8x8x32xf32, #tpu.memory_space<vmem>>, vector<1x8x32xf32>,
    %c3_99 = arith.constant 3 : index
    %c0_100 = arith.constant 0 : index
    %c0_101 = arith.constant 0 : index
    %368 = vector.load %arg10[%c3_99, %c0_100, %c0_101] : memref<8x8x32xf32, #tpu.memory_space<vmem>>, vector<1x8x32xf32>
    %369 = vector.shape_cast %368 : vector<1x8x32xf32> to vector<8x32xf32>
    %370 = vector.shape_cast %364 : vector<8x32xf32> to vector<1x8x32xf32>
    tpu.vector_store %arg10[%c3_99, %c0_100, %c0_101], %370 {strides = array<i32>} : memref<8x8x32xf32, #tpu.memory_space<vmem>>, vector<1x8x32xf32>,
    %371 = tpu.concatenate %334, %364 in 1 : vector<8x32xf32>, vector<8x32xf32> -> vector<8x64xf32>
    %cst_102 = arith.constant dense<0.000000e+00> : vector<8x192xf32>
    %372 = tpu.matmul %371, %9, %cst_102 {dimension_numbers = #tpu.dot_dimension_numbers<[1], [0], [0], [1], [0, 0, 1, 1], [], []>} : vector<8x64xf32>, vector<64x192xf32>, vector<8x192xf32> -> vector<8x192xf32>
    %c5_103 = arith.constant 5 : index
    %c0_104 = arith.constant 0 : index
    %c0_105 = arith.constant 0 : index
    %373 = vector.load %arg8[%c5_103, %c0_104, %c0_105] : memref<8x8x192xf32, #tpu.memory_space<vmem>>, vector<1x8x192xf32>
    %374 = vector.shape_cast %373 : vector<1x8x192xf32> to vector<8x192xf32>
    %c2_106 = arith.constant 2 : index
    %c0_107 = arith.constant 0 : index
    %c0_108 = arith.constant 0 : index
    %375 = vector.load %arg8[%c2_106, %c0_107, %c0_108] : memref<8x8x192xf32, #tpu.memory_space<vmem>>, vector<1x8x192xf32>
    %376 = vector.shape_cast %375 : vector<1x8x192xf32> to vector<8x192xf32>
    %377 = vector.extract_strided_slice %374 {offsets = [0, 0], sizes = [8, 32], strides = [1, 1]} : vector<8x192xf32> to vector<8x32xf32>
    %378 = vector.extract_strided_slice %372 {offsets = [0, 0], sizes = [8, 32], strides = [1, 1]} : vector<8x192xf32> to vector<8x32xf32>
    %379 = arith.addf %377, %378 : vector<8x32xf32>
    %380 = arith.negf %379 : vector<8x32xf32>
    %381 = math.exp %380 : vector<8x32xf32>
    %cst_109 = arith.constant 1.000000e+00 : f32
    %382 = vector.broadcast %cst_109 : f32 to vector<8x32xf32>
    %383 = arith.addf %382, %381 : vector<8x32xf32>
    %384 = arith.divf %382, %383 : vector<8x32xf32>
    %385 = vector.extract_strided_slice %374 {offsets = [0, 32], sizes = [8, 32], strides = [1, 1]} : vector<8x192xf32> to vector<8x32xf32>
    %386 = vector.extract_strided_slice %372 {offsets = [0, 32], sizes = [8, 32], strides = [1, 1]} : vector<8x192xf32> to vector<8x32xf32>
    %387 = arith.addf %385, %386 : vector<8x32xf32>
    %388 = arith.negf %387 : vector<8x32xf32>
    %389 = math.exp %388 : vector<8x32xf32>
    %cst_110 = arith.constant 1.000000e+00 : f32
    %390 = vector.broadcast %cst_110 : f32 to vector<8x32xf32>
    %391 = arith.addf %390, %389 : vector<8x32xf32>
    %392 = arith.divf %390, %391 : vector<8x32xf32>
    %393 = vector.extract_strided_slice %374 {offsets = [0, 64], sizes = [8, 32], strides = [1, 1]} : vector<8x192xf32> to vector<8x32xf32>
    %394 = vector.extract_strided_slice %372 {offsets = [0, 64], sizes = [8, 32], strides = [1, 1]} : vector<8x192xf32> to vector<8x32xf32>
    %395 = vector.extract_strided_slice %10 {offsets = [0, 0], sizes = [1, 32], strides = [1, 1]} : vector<1x64xf32> to vector<1x32xf32>
    %396 = vector.broadcast %395 : vector<1x32xf32> to vector<8x32xf32>
    %397 = arith.addf %394, %396 : vector<8x32xf32>
    %398 = arith.mulf %384, %397 : vector<8x32xf32>
    %399 = arith.addf %393, %398 : vector<8x32xf32>
    %400 = math.tanh %399 : vector<8x32xf32>
    %cst_111 = arith.constant 1.000000e+00 : f32
    %401 = vector.broadcast %cst_111 : f32 to vector<8x32xf32>
    %402 = arith.subf %401, %392 : vector<8x32xf32>
    %403 = arith.mulf %402, %400 : vector<8x32xf32>
    %404 = vector.extract_strided_slice %371 {offsets = [0, 0], sizes = [8, 32], strides = [1, 1]} : vector<8x64xf32> to vector<8x32xf32>
    %405 = arith.mulf %392, %404 : vector<8x32xf32>
    %406 = arith.addf %403, %405 : vector<8x32xf32>
    %407 = vector.extract_strided_slice %376 {offsets = [0, 96], sizes = [8, 32], strides = [1, 1]} : vector<8x192xf32> to vector<8x32xf32>
    %408 = vector.extract_strided_slice %372 {offsets = [0, 96], sizes = [8, 32], strides = [1, 1]} : vector<8x192xf32> to vector<8x32xf32>
    %409 = arith.addf %407, %408 : vector<8x32xf32>
    %410 = arith.negf %409 : vector<8x32xf32>
    %411 = math.exp %410 : vector<8x32xf32>
    %cst_112 = arith.constant 1.000000e+00 : f32
    %412 = vector.broadcast %cst_112 : f32 to vector<8x32xf32>
    %413 = arith.addf %412, %411 : vector<8x32xf32>
    %414 = arith.divf %412, %413 : vector<8x32xf32>
    %415 = vector.extract_strided_slice %376 {offsets = [0, 128], sizes = [8, 32], strides = [1, 1]} : vector<8x192xf32> to vector<8x32xf32>
    %416 = vector.extract_strided_slice %372 {offsets = [0, 128], sizes = [8, 32], strides = [1, 1]} : vector<8x192xf32> to vector<8x32xf32>
    %417 = arith.addf %415, %416 : vector<8x32xf32>
    %418 = arith.negf %417 : vector<8x32xf32>
    %419 = math.exp %418 : vector<8x32xf32>
    %cst_113 = arith.constant 1.000000e+00 : f32
    %420 = vector.broadcast %cst_113 : f32 to vector<8x32xf32>
    %421 = arith.addf %420, %419 : vector<8x32xf32>
    %422 = arith.divf %420, %421 : vector<8x32xf32>
    %423 = vector.extract_strided_slice %376 {offsets = [0, 160], sizes = [8, 32], strides = [1, 1]} : vector<8x192xf32> to vector<8x32xf32>
    %424 = vector.extract_strided_slice %372 {offsets = [0, 160], sizes = [8, 32], strides = [1, 1]} : vector<8x192xf32> to vector<8x32xf32>
    %425 = vector.extract_strided_slice %10 {offsets = [0, 32], sizes = [1, 32], strides = [1, 1]} : vector<1x64xf32> to vector<1x32xf32>
    %426 = vector.broadcast %425 : vector<1x32xf32> to vector<8x32xf32>
    %427 = arith.addf %424, %426 : vector<8x32xf32>
    %428 = arith.mulf %414, %427 : vector<8x32xf32>
    %429 = arith.addf %423, %428 : vector<8x32xf32>
    %430 = math.tanh %429 : vector<8x32xf32>
    %cst_114 = arith.constant 1.000000e+00 : f32
    %431 = vector.broadcast %cst_114 : f32 to vector<8x32xf32>
    %432 = arith.subf %431, %422 : vector<8x32xf32>
    %433 = arith.mulf %432, %430 : vector<8x32xf32>
    %434 = vector.extract_strided_slice %371 {offsets = [0, 32], sizes = [8, 32], strides = [1, 1]} : vector<8x64xf32> to vector<8x32xf32>
    %435 = arith.mulf %422, %434 : vector<8x32xf32>
    %436 = arith.addf %433, %435 : vector<8x32xf32>
    %c5_115 = arith.constant 5 : index
    %c0_116 = arith.constant 0 : index
    %c0_117 = arith.constant 0 : index
    %437 = vector.load %arg9[%c5_115, %c0_116, %c0_117] : memref<8x8x32xf32, #tpu.memory_space<vmem>>, vector<1x8x32xf32>
    %438 = vector.shape_cast %437 : vector<1x8x32xf32> to vector<8x32xf32>
    %439 = vector.shape_cast %406 : vector<8x32xf32> to vector<1x8x32xf32>
    tpu.vector_store %arg9[%c5_115, %c0_116, %c0_117], %439 {strides = array<i32>} : memref<8x8x32xf32, #tpu.memory_space<vmem>>, vector<1x8x32xf32>,
    %c2_118 = arith.constant 2 : index
    %c0_119 = arith.constant 0 : index
    %c0_120 = arith.constant 0 : index
    %440 = vector.load %arg10[%c2_118, %c0_119, %c0_120] : memref<8x8x32xf32, #tpu.memory_space<vmem>>, vector<1x8x32xf32>
    %441 = vector.shape_cast %440 : vector<1x8x32xf32> to vector<8x32xf32>
    %442 = vector.shape_cast %436 : vector<8x32xf32> to vector<1x8x32xf32>
    tpu.vector_store %arg10[%c2_118, %c0_119, %c0_120], %442 {strides = array<i32>} : memref<8x8x32xf32, #tpu.memory_space<vmem>>, vector<1x8x32xf32>,
    %443 = tpu.concatenate %406, %436 in 1 : vector<8x32xf32>, vector<8x32xf32> -> vector<8x64xf32>
    %cst_121 = arith.constant dense<0.000000e+00> : vector<8x192xf32>
    %444 = tpu.matmul %443, %9, %cst_121 {dimension_numbers = #tpu.dot_dimension_numbers<[1], [0], [0], [1], [0, 0, 1, 1], [], []>} : vector<8x64xf32>, vector<64x192xf32>, vector<8x192xf32> -> vector<8x192xf32>
    %c6_122 = arith.constant 6 : index
    %c0_123 = arith.constant 0 : index
    %c0_124 = arith.constant 0 : index
    %445 = vector.load %arg8[%c6_122, %c0_123, %c0_124] : memref<8x8x192xf32, #tpu.memory_space<vmem>>, vector<1x8x192xf32>
    %446 = vector.shape_cast %445 : vector<1x8x192xf32> to vector<8x192xf32>
    %c1_125 = arith.constant 1 : index
    %c0_126 = arith.constant 0 : index
    %c0_127 = arith.constant 0 : index
    %447 = vector.load %arg8[%c1_125, %c0_126, %c0_127] : memref<8x8x192xf32, #tpu.memory_space<vmem>>, vector<1x8x192xf32>
    %448 = vector.shape_cast %447 : vector<1x8x192xf32> to vector<8x192xf32>
    %449 = vector.extract_strided_slice %446 {offsets = [0, 0], sizes = [8, 32], strides = [1, 1]} : vector<8x192xf32> to vector<8x32xf32>
    %450 = vector.extract_strided_slice %444 {offsets = [0, 0], sizes = [8, 32], strides = [1, 1]} : vector<8x192xf32> to vector<8x32xf32>
    %451 = arith.addf %449, %450 : vector<8x32xf32>
    %452 = arith.negf %451 : vector<8x32xf32>
    %453 = math.exp %452 : vector<8x32xf32>
    %cst_128 = arith.constant 1.000000e+00 : f32
    %454 = vector.broadcast %cst_128 : f32 to vector<8x32xf32>
    %455 = arith.addf %454, %453 : vector<8x32xf32>
    %456 = arith.divf %454, %455 : vector<8x32xf32>
    %457 = vector.extract_strided_slice %446 {offsets = [0, 32], sizes = [8, 32], strides = [1, 1]} : vector<8x192xf32> to vector<8x32xf32>
    %458 = vector.extract_strided_slice %444 {offsets = [0, 32], sizes = [8, 32], strides = [1, 1]} : vector<8x192xf32> to vector<8x32xf32>
    %459 = arith.addf %457, %458 : vector<8x32xf32>
    %460 = arith.negf %459 : vector<8x32xf32>
    %461 = math.exp %460 : vector<8x32xf32>
    %cst_129 = arith.constant 1.000000e+00 : f32
    %462 = vector.broadcast %cst_129 : f32 to vector<8x32xf32>
    %463 = arith.addf %462, %461 : vector<8x32xf32>
    %464 = arith.divf %462, %463 : vector<8x32xf32>
    %465 = vector.extract_strided_slice %446 {offsets = [0, 64], sizes = [8, 32], strides = [1, 1]} : vector<8x192xf32> to vector<8x32xf32>
    %466 = vector.extract_strided_slice %444 {offsets = [0, 64], sizes = [8, 32], strides = [1, 1]} : vector<8x192xf32> to vector<8x32xf32>
    %467 = vector.extract_strided_slice %10 {offsets = [0, 0], sizes = [1, 32], strides = [1, 1]} : vector<1x64xf32> to vector<1x32xf32>
    %468 = vector.broadcast %467 : vector<1x32xf32> to vector<8x32xf32>
    %469 = arith.addf %466, %468 : vector<8x32xf32>
    %470 = arith.mulf %456, %469 : vector<8x32xf32>
    %471 = arith.addf %465, %470 : vector<8x32xf32>
    %472 = math.tanh %471 : vector<8x32xf32>
    %cst_130 = arith.constant 1.000000e+00 : f32
    %473 = vector.broadcast %cst_130 : f32 to vector<8x32xf32>
    %474 = arith.subf %473, %464 : vector<8x32xf32>
    %475 = arith.mulf %474, %472 : vector<8x32xf32>
    %476 = vector.extract_strided_slice %443 {offsets = [0, 0], sizes = [8, 32], strides = [1, 1]} : vector<8x64xf32> to vector<8x32xf32>
    %477 = arith.mulf %464, %476 : vector<8x32xf32>
    %478 = arith.addf %475, %477 : vector<8x32xf32>
    %479 = vector.extract_strided_slice %448 {offsets = [0, 96], sizes = [8, 32], strides = [1, 1]} : vector<8x192xf32> to vector<8x32xf32>
    %480 = vector.extract_strided_slice %444 {offsets = [0, 96], sizes = [8, 32], strides = [1, 1]} : vector<8x192xf32> to vector<8x32xf32>
    %481 = arith.addf %479, %480 : vector<8x32xf32>
    %482 = arith.negf %481 : vector<8x32xf32>
    %483 = math.exp %482 : vector<8x32xf32>
    %cst_131 = arith.constant 1.000000e+00 : f32
    %484 = vector.broadcast %cst_131 : f32 to vector<8x32xf32>
    %485 = arith.addf %484, %483 : vector<8x32xf32>
    %486 = arith.divf %484, %485 : vector<8x32xf32>
    %487 = vector.extract_strided_slice %448 {offsets = [0, 128], sizes = [8, 32], strides = [1, 1]} : vector<8x192xf32> to vector<8x32xf32>
    %488 = vector.extract_strided_slice %444 {offsets = [0, 128], sizes = [8, 32], strides = [1, 1]} : vector<8x192xf32> to vector<8x32xf32>
    %489 = arith.addf %487, %488 : vector<8x32xf32>
    %490 = arith.negf %489 : vector<8x32xf32>
    %491 = math.exp %490 : vector<8x32xf32>
    %cst_132 = arith.constant 1.000000e+00 : f32
    %492 = vector.broadcast %cst_132 : f32 to vector<8x32xf32>
    %493 = arith.addf %492, %491 : vector<8x32xf32>
    %494 = arith.divf %492, %493 : vector<8x32xf32>
    %495 = vector.extract_strided_slice %448 {offsets = [0, 160], sizes = [8, 32], strides = [1, 1]} : vector<8x192xf32> to vector<8x32xf32>
    %496 = vector.extract_strided_slice %444 {offsets = [0, 160], sizes = [8, 32], strides = [1, 1]} : vector<8x192xf32> to vector<8x32xf32>
    %497 = vector.extract_strided_slice %10 {offsets = [0, 32], sizes = [1, 32], strides = [1, 1]} : vector<1x64xf32> to vector<1x32xf32>
    %498 = vector.broadcast %497 : vector<1x32xf32> to vector<8x32xf32>
    %499 = arith.addf %496, %498 : vector<8x32xf32>
    %500 = arith.mulf %486, %499 : vector<8x32xf32>
    %501 = arith.addf %495, %500 : vector<8x32xf32>
    %502 = math.tanh %501 : vector<8x32xf32>
    %cst_133 = arith.constant 1.000000e+00 : f32
    %503 = vector.broadcast %cst_133 : f32 to vector<8x32xf32>
    %504 = arith.subf %503, %494 : vector<8x32xf32>
    %505 = arith.mulf %504, %502 : vector<8x32xf32>
    %506 = vector.extract_strided_slice %443 {offsets = [0, 32], sizes = [8, 32], strides = [1, 1]} : vector<8x64xf32> to vector<8x32xf32>
    %507 = arith.mulf %494, %506 : vector<8x32xf32>
    %508 = arith.addf %505, %507 : vector<8x32xf32>
    %c6_134 = arith.constant 6 : index
    %c0_135 = arith.constant 0 : index
    %c0_136 = arith.constant 0 : index
    %509 = vector.load %arg9[%c6_134, %c0_135, %c0_136] : memref<8x8x32xf32, #tpu.memory_space<vmem>>, vector<1x8x32xf32>
    %510 = vector.shape_cast %509 : vector<1x8x32xf32> to vector<8x32xf32>
    %511 = vector.shape_cast %478 : vector<8x32xf32> to vector<1x8x32xf32>
    tpu.vector_store %arg9[%c6_134, %c0_135, %c0_136], %511 {strides = array<i32>} : memref<8x8x32xf32, #tpu.memory_space<vmem>>, vector<1x8x32xf32>,
    %c1_137 = arith.constant 1 : index
    %c0_138 = arith.constant 0 : index
    %c0_139 = arith.constant 0 : index
    %512 = vector.load %arg10[%c1_137, %c0_138, %c0_139] : memref<8x8x32xf32, #tpu.memory_space<vmem>>, vector<1x8x32xf32>
    %513 = vector.shape_cast %512 : vector<1x8x32xf32> to vector<8x32xf32>
    %514 = vector.shape_cast %508 : vector<8x32xf32> to vector<1x8x32xf32>
    tpu.vector_store %arg10[%c1_137, %c0_138, %c0_139], %514 {strides = array<i32>} : memref<8x8x32xf32, #tpu.memory_space<vmem>>, vector<1x8x32xf32>,
    %515 = tpu.concatenate %478, %508 in 1 : vector<8x32xf32>, vector<8x32xf32> -> vector<8x64xf32>
    %cst_140 = arith.constant dense<0.000000e+00> : vector<8x192xf32>
    %516 = tpu.matmul %515, %9, %cst_140 {dimension_numbers = #tpu.dot_dimension_numbers<[1], [0], [0], [1], [0, 0, 1, 1], [], []>} : vector<8x64xf32>, vector<64x192xf32>, vector<8x192xf32> -> vector<8x192xf32>
    %c7_141 = arith.constant 7 : index
    %c0_142 = arith.constant 0 : index
    %c0_143 = arith.constant 0 : index
    %517 = vector.load %arg8[%c7_141, %c0_142, %c0_143] : memref<8x8x192xf32, #tpu.memory_space<vmem>>, vector<1x8x192xf32>
    %518 = vector.shape_cast %517 : vector<1x8x192xf32> to vector<8x192xf32>
    %c0_144 = arith.constant 0 : index
    %c0_145 = arith.constant 0 : index
    %c0_146 = arith.constant 0 : index
    %519 = vector.load %arg8[%c0_144, %c0_145, %c0_146] : memref<8x8x192xf32, #tpu.memory_space<vmem>>, vector<1x8x192xf32>
    %520 = vector.shape_cast %519 : vector<1x8x192xf32> to vector<8x192xf32>
    %521 = vector.extract_strided_slice %518 {offsets = [0, 0], sizes = [8, 32], strides = [1, 1]} : vector<8x192xf32> to vector<8x32xf32>
    %522 = vector.extract_strided_slice %516 {offsets = [0, 0], sizes = [8, 32], strides = [1, 1]} : vector<8x192xf32> to vector<8x32xf32>
    %523 = arith.addf %521, %522 : vector<8x32xf32>
    %524 = arith.negf %523 : vector<8x32xf32>
    %525 = math.exp %524 : vector<8x32xf32>
    %cst_147 = arith.constant 1.000000e+00 : f32
    %526 = vector.broadcast %cst_147 : f32 to vector<8x32xf32>
    %527 = arith.addf %526, %525 : vector<8x32xf32>
    %528 = arith.divf %526, %527 : vector<8x32xf32>
    %529 = vector.extract_strided_slice %518 {offsets = [0, 32], sizes = [8, 32], strides = [1, 1]} : vector<8x192xf32> to vector<8x32xf32>
    %530 = vector.extract_strided_slice %516 {offsets = [0, 32], sizes = [8, 32], strides = [1, 1]} : vector<8x192xf32> to vector<8x32xf32>
    %531 = arith.addf %529, %530 : vector<8x32xf32>
    %532 = arith.negf %531 : vector<8x32xf32>
    %533 = math.exp %532 : vector<8x32xf32>
    %cst_148 = arith.constant 1.000000e+00 : f32
    %534 = vector.broadcast %cst_148 : f32 to vector<8x32xf32>
    %535 = arith.addf %534, %533 : vector<8x32xf32>
    %536 = arith.divf %534, %535 : vector<8x32xf32>
    %537 = vector.extract_strided_slice %518 {offsets = [0, 64], sizes = [8, 32], strides = [1, 1]} : vector<8x192xf32> to vector<8x32xf32>
    %538 = vector.extract_strided_slice %516 {offsets = [0, 64], sizes = [8, 32], strides = [1, 1]} : vector<8x192xf32> to vector<8x32xf32>
    %539 = vector.extract_strided_slice %10 {offsets = [0, 0], sizes = [1, 32], strides = [1, 1]} : vector<1x64xf32> to vector<1x32xf32>
    %540 = vector.broadcast %539 : vector<1x32xf32> to vector<8x32xf32>
    %541 = arith.addf %538, %540 : vector<8x32xf32>
    %542 = arith.mulf %528, %541 : vector<8x32xf32>
    %543 = arith.addf %537, %542 : vector<8x32xf32>
    %544 = math.tanh %543 : vector<8x32xf32>
    %cst_149 = arith.constant 1.000000e+00 : f32
    %545 = vector.broadcast %cst_149 : f32 to vector<8x32xf32>
    %546 = arith.subf %545, %536 : vector<8x32xf32>
    %547 = arith.mulf %546, %544 : vector<8x32xf32>
    %548 = vector.extract_strided_slice %515 {offsets = [0, 0], sizes = [8, 32], strides = [1, 1]} : vector<8x64xf32> to vector<8x32xf32>
    %549 = arith.mulf %536, %548 : vector<8x32xf32>
    %550 = arith.addf %547, %549 : vector<8x32xf32>
    %551 = vector.extract_strided_slice %520 {offsets = [0, 96], sizes = [8, 32], strides = [1, 1]} : vector<8x192xf32> to vector<8x32xf32>
    %552 = vector.extract_strided_slice %516 {offsets = [0, 96], sizes = [8, 32], strides = [1, 1]} : vector<8x192xf32> to vector<8x32xf32>
    %553 = arith.addf %551, %552 : vector<8x32xf32>
    %554 = arith.negf %553 : vector<8x32xf32>
    %555 = math.exp %554 : vector<8x32xf32>
    %cst_150 = arith.constant 1.000000e+00 : f32
    %556 = vector.broadcast %cst_150 : f32 to vector<8x32xf32>
    %557 = arith.addf %556, %555 : vector<8x32xf32>
    %558 = arith.divf %556, %557 : vector<8x32xf32>
    %559 = vector.extract_strided_slice %520 {offsets = [0, 128], sizes = [8, 32], strides = [1, 1]} : vector<8x192xf32> to vector<8x32xf32>
    %560 = vector.extract_strided_slice %516 {offsets = [0, 128], sizes = [8, 32], strides = [1, 1]} : vector<8x192xf32> to vector<8x32xf32>
    %561 = arith.addf %559, %560 : vector<8x32xf32>
    %562 = arith.negf %561 : vector<8x32xf32>
    %563 = math.exp %562 : vector<8x32xf32>
    %cst_151 = arith.constant 1.000000e+00 : f32
    %564 = vector.broadcast %cst_151 : f32 to vector<8x32xf32>
    %565 = arith.addf %564, %563 : vector<8x32xf32>
    %566 = arith.divf %564, %565 : vector<8x32xf32>
    %567 = vector.extract_strided_slice %520 {offsets = [0, 160], sizes = [8, 32], strides = [1, 1]} : vector<8x192xf32> to vector<8x32xf32>
    %568 = vector.extract_strided_slice %516 {offsets = [0, 160], sizes = [8, 32], strides = [1, 1]} : vector<8x192xf32> to vector<8x32xf32>
    %569 = vector.extract_strided_slice %10 {offsets = [0, 32], sizes = [1, 32], strides = [1, 1]} : vector<1x64xf32> to vector<1x32xf32>
    %570 = vector.broadcast %569 : vector<1x32xf32> to vector<8x32xf32>
    %571 = arith.addf %568, %570 : vector<8x32xf32>
    %572 = arith.mulf %558, %571 : vector<8x32xf32>
    %573 = arith.addf %567, %572 : vector<8x32xf32>
    %574 = math.tanh %573 : vector<8x32xf32>
    %cst_152 = arith.constant 1.000000e+00 : f32
    %575 = vector.broadcast %cst_152 : f32 to vector<8x32xf32>
    %576 = arith.subf %575, %566 : vector<8x32xf32>
    %577 = arith.mulf %576, %574 : vector<8x32xf32>
    %578 = vector.extract_strided_slice %515 {offsets = [0, 32], sizes = [8, 32], strides = [1, 1]} : vector<8x64xf32> to vector<8x32xf32>
    %579 = arith.mulf %566, %578 : vector<8x32xf32>
    %580 = arith.addf %577, %579 : vector<8x32xf32>
    %c7_153 = arith.constant 7 : index
    %c0_154 = arith.constant 0 : index
    %c0_155 = arith.constant 0 : index
    %581 = vector.load %arg9[%c7_153, %c0_154, %c0_155] : memref<8x8x32xf32, #tpu.memory_space<vmem>>, vector<1x8x32xf32>
    %582 = vector.shape_cast %581 : vector<1x8x32xf32> to vector<8x32xf32>
    %583 = vector.shape_cast %550 : vector<8x32xf32> to vector<1x8x32xf32>
    tpu.vector_store %arg9[%c7_153, %c0_154, %c0_155], %583 {strides = array<i32>} : memref<8x8x32xf32, #tpu.memory_space<vmem>>, vector<1x8x32xf32>,
    %c0_156 = arith.constant 0 : index
    %c0_157 = arith.constant 0 : index
    %c0_158 = arith.constant 0 : index
    %584 = vector.load %arg10[%c0_156, %c0_157, %c0_158] : memref<8x8x32xf32, #tpu.memory_space<vmem>>, vector<1x8x32xf32>
    %585 = vector.shape_cast %584 : vector<1x8x32xf32> to vector<8x32xf32>
    %586 = vector.shape_cast %580 : vector<8x32xf32> to vector<1x8x32xf32>
    tpu.vector_store %arg10[%c0_156, %c0_157, %c0_158], %586 {strides = array<i32>} : memref<8x8x32xf32, #tpu.memory_space<vmem>>, vector<1x8x32xf32>,
    %c0_159 = arith.constant 0 : index
    %c0_160 = arith.constant 0 : index
    %c0_161 = arith.constant 0 : index
    %587 = vector.load %arg9[%c0_159, %c0_160, %c0_161] : memref<8x8x32xf32, #tpu.memory_space<vmem>>, vector<8x8x32xf32>
    %588 = vector.shape_cast %587 : vector<8x8x32xf32> to vector<64x32xf32>
    %cst_162 = arith.constant 0.000000e+00 : f32
    %589 = vector.broadcast %cst_162 : f32 to vector<64x32xf32>
    %590 = arith.maximumf %588, %589 : vector<64x32xf32>
    %c0_163 = arith.constant 0 : index
    %c0_164 = arith.constant 0 : index
    %c0_165 = arith.constant 0 : index
    %591 = vector.load %arg10[%c0_163, %c0_164, %c0_165] : memref<8x8x32xf32, #tpu.memory_space<vmem>>, vector<8x8x32xf32>
    %592 = vector.shape_cast %591 : vector<8x8x32xf32> to vector<64x32xf32>
    %cst_166 = arith.constant 0.000000e+00 : f32
    %593 = vector.broadcast %cst_166 : f32 to vector<64x32xf32>
    %594 = arith.maximumf %592, %593 : vector<64x32xf32>
    %c0_167 = arith.constant 0 : index
    %c0_168 = arith.constant 0 : index
    %595 = vector.load %arg5[%c0_167, %c0_168] : memref<64x128xf32, #tpu.memory_space<vmem>>, vector<32x128xf32>
    %cst_169 = arith.constant dense<0.000000e+00> : vector<64x128xf32>
    %596 = tpu.matmul %590, %595, %cst_169 {dimension_numbers = #tpu.dot_dimension_numbers<[1], [0], [0], [1], [0, 0, 1, 1], [], []>} : vector<64x32xf32>, vector<32x128xf32>, vector<64x128xf32> -> vector<64x128xf32>
    %c32 = arith.constant 32 : index
    %c0_170 = arith.constant 0 : index
    %597 = vector.load %arg5[%c32, %c0_170] : memref<64x128xf32, #tpu.memory_space<vmem>>, vector<32x128xf32>
    %cst_171 = arith.constant dense<0.000000e+00> : vector<64x128xf32>
    %598 = tpu.matmul %594, %597, %cst_171 {dimension_numbers = #tpu.dot_dimension_numbers<[1], [0], [0], [1], [0, 0, 1, 1], [], []>} : vector<64x32xf32>, vector<32x128xf32>, vector<64x128xf32> -> vector<64x128xf32>
    %599 = arith.addf %596, %598 : vector<64x128xf32>
    %c0_172 = arith.constant 0 : index
    %c0_173 = arith.constant 0 : index
    %600 = vector.load %arg6[%c0_172, %c0_173] : memref<1x128xf32, #tpu.memory_space<vmem>>, vector<1x128xf32>
    %601 = vector.broadcast %600 : vector<1x128xf32> to vector<64x128xf32>
    %602 = arith.addf %599, %601 : vector<64x128xf32>
    %603 = vector.shape_cast %602 : vector<64x128xf32> to vector<8x8x128xf32>
    %c0_174 = arith.constant 0 : index
    %c0_175 = arith.constant 0 : index
    %c0_176 = arith.constant 0 : index
    %604 = vector.load %arg7[%c0_174, %c0_175, %c0_176] : memref<8x8x128xf32, #tpu.memory_space<vmem>>, vector<8x8x128xf32>
    tpu.vector_store %arg7[%c0_174, %c0_175, %c0_176], %603 {strides = array<i32>} : memref<8x8x128xf32, #tpu.memory_space<vmem>>, vector<8x8x128xf32>,
    return
  }
}

</mosaic_0001>

<bundles_post_ra>
// kernel: toxic_segmenter_forward.1
= control target key start
LH: loop header
LB: loop body
LE: loop exit
PB: predicated region body
PF: predicated region fallthrough
CT: control target
= control target key end

     0   :  { %v2088_v3 = vmov 0.0   ;;  %vm54_vm0 = vcmask 261120   ;;  %s2089_s27 = smov 64   ;;  %v44_v34 = vlaneseq  ;;  %vm193_vm1 = vcmask 523264   ;;  %s2091_s21 = smov 32   ;;  %s2721_s1 = inlined_call_operand.vmem [shape: f32[32,192], index: 1, kind: input, shape index: {}]   ;;  %s2722_s2 = inlined_call_operand.vmem [shape: f32[64,192], index: 2, kind: input, shape index: {}]   ;;  %s2723_s0 = inlined_call_operand.vmem [shape: f32[8,8,32], index: 0, kind: input, shape index: {}]   ;;  %s2724_s4 = inlined_call_operand.vmem [shape: f32[1,64], index: 4, kind: input, shape index: {}]   ;;  %s2725_s3 = inlined_call_operand.vmem [shape: f32[1,192], index: 3, kind: input, shape index: {}]   ;;  %s2726_s5 = inlined_call_operand.vmem [shape: f32[64,128], index: 5, kind: input, shape index: {}]   ;;  %s2727_s6 = inlined_call_operand.vmem [shape: f32[1,128], index: 6, kind: input, shape index: {}]   ;;  %s2728_s7 = inlined_call_operand.vmem [shape: f32[8,8,128], index: 7, kind: output, shape index: {}]  }
   0x1   :  { %v41_v0 = vld [vmem:[%s2721_s1 + $0x38] sm:$0xff]  ;;  %v40_v2 = vld [vmem:[%s2721_s1 + $0x30] sm:$0xff]  ;;  %143 = vmatprep.mubr.f32.mxu0 %v2088_v3  ;;  %293 = vmatprep.mubr.f32.mxu1 %v2088_v3  ;;  %v39_v5 = vld [vmem:[%s2721_s1 + $0x28] sm:$0xff] }
   0x2   :  { %v2138_v1 = vld [vmem:[%s2722_s2 + $0x78] sm:$0xff]  ;;  %103 = vmatprep.subr.mxu0 %v41_v0  ;;  %v2149_v4 = vld [vmem:[%s2722_s2 + $0x70] sm:$0xff]  ;;  %v2157_v6 = vld [vmem:[%s2722_s2 + $0x68] sm:$0xff]  ;;  %v45_v35 = vshrl.u32 %v44_v34, 7 }
   0x3   :  { %245 = vmatprep.subr.mxu1 %v2138_v1  ;;  %104 = vmatpush1.msra.mxu0 %v40_v2  ;;  %v38_v7 = vld [vmem:[%s2721_s1 + $0x20] sm:$0xff]  ;;  %v37_v9 = vld [vmem:[%s2721_s1 + $0x18] sm:$0xff]  ;;  %v36_v11 = vld [vmem:[%s2721_s1 + $0x10] sm:$0xff] }
   0x4   :  { %246 = vmatpush1.msra.mxu1 %v2149_v4  ;;  %v2166_v8 = vld [vmem:[%s2722_s2 + $0x60] sm:$0xff]  ;;  %105 = vmatprep.subr.mxu0 %v39_v5  ;;  %v2175_v10 = vld [vmem:[%s2722_s2 + $0x58] sm:$0xff]  ;;  %v2183_v12 = vld [vmem:[%s2722_s2 + $0x50] sm:$0xff]  ;;  %v46_v36 = vsub.s32 0, %v45_v35  ;;  %v50_v39 = vsub.s32 1, %v45_v35 }
   0x5   :  { %247 = vmatprep.subr.mxu1 %v2157_v6  ;;  %106 = vmatpush1.msra.mxu0 %v38_v7  ;;  %v35_v13 = vld [vmem:[%s2721_s1 + $0x8] sm:$0xff]  ;;  %v34_v15 = vld [vmem:[%s2721_s1] sm:$0xff]  ;;  %v2210_v18 = vld [vmem:[%s2722_s2 + $0x38] sm:$0xff] }
   0x6   :  { %248 = vmatpush1.msra.mxu1 %v2166_v8  ;;  %v2192_v14 = vld [vmem:[%s2722_s2 + $0x48] sm:$0xff]  ;;  %107 = vmatprep.subr.mxu0 %v37_v9  ;;  %v2201_v16 = vld [vmem:[%s2722_s2 + $0x40] sm:$0xff]  ;;  %v2216_v19 = vld [vmem:[%s2722_s2 + $0x30] sm:$0xff] }
   0x7   :  { %249 = vmatprep.subr.mxu1 %v2175_v10  ;;  %108 = vmatpush1.msra.mxu0 %v36_v11  ;;  %v26_v17 = vld [vmem:[%s2723_s0] sm:$0xff]  ;;  %v2222_v20 = vld [vmem:[%s2722_s2 + $0x28] sm:$0xff]  ;;  %v2239_v23 = vld [vmem:[%s2722_s2 + $0x18] sm:$0xff] }
   0x8   :  { %250 = vmatpush1.msra.mxu1 %v2183_v12  ;;  %109 = vmatprep.subr.mxu0 %v35_v13  ;;  %v2229_v21 = vld [vmem:[%s2722_s2 + $0x20] sm:$0xff]  ;;  %v27_v22 = vld [vmem:[%s2723_s0 + $0x8] sm:$0xff]  ;;  %v2250_v25 = vld [vmem:[%s2722_s2 + $0x10] sm:$0xff] }
   0x9   :  { %251 = vmatprep.subr.mxu1 %v2192_v14  ;;  %110 = vmatpush1.msra.mxu0 %v34_v15  ;;  %v2244_v24 = vld [vmem:[%s2724_s4] ss:$0 sm:$0xff]  ;;  %v2258_v26 = vld [vmem:[%s2722_s2 + $0x8] sm:$0xff]  ;;  %v28_v28 = vld [vmem:[%s2723_s0 + $0x10] sm:$0xff] }
   0xa   :  { %252 = vmatpush1.msra.mxu1 %v2201_v16  ;;  %1810 = vmatmul.mubr.msk.f32.vlgmr.msra.gmra.mxu0 %vm54_vm0, %v26_v17  ;;  %v2266_v27 = vld [vmem:[%s2722_s2] sm:$0xff]  ;;  %v29_v29 = vld [vmem:[%s2723_s0 + $0x18] sm:$0xff]  ;;  %v31_v31 = vld [vmem:[%s2723_s0 + $0x28] sm:$0xff] }
   0xb   :  { %253 = vmatprep.subr.mxu1 %v2210_v18  ;;  %149 = vmatprep.mubr.f32.mxu0 %v2088_v3  ;;  %v30_v30 = vld [vmem:[%s2723_s0 + $0x20] sm:$0xff]  ;;  %v32_v32 = vld [vmem:[%s2723_s0 + $0x30] sm:$0xff]  ;;  %v33_v33 = vld [vmem:[%s2723_s0 + $0x38] sm:$0xff] }
   0xc   :  { %254 = vmatpush1.msra.mxu1 %v2216_v19  ;;  %316 = vrot.lane.b32.xlu0 %v2244_v24, %s2089_s27  ;;  %v42_v37 = vld [vmem:[%s2725_s3] sm:$0x3]  ;;  %s2090_s3 = smov 96  }
   0xd   :  { %255 = vmatprep.subr.mxu1 %v2222_v20  ;;  %564 = vmatprep.subr.mxu0 %v2138_v1  ;;  %v47_v38 = vrot.slane %v42_v37, %v46_v36  ;;  %v51_v42 = vrot.slane %v42_v37, %v50_v39 }
   0xe   :  { %256 = vmatpush1.msra.mxu1 %v2229_v21  ;;  %1811 = vmatmul.mubr.msk.f32.gmra.mxu0 %vm54_vm0, %v27_v22 }
   0xf   :  { %257 = vmatprep.subr.mxu1 %v2239_v23  ;;  %155 = vmatprep.mubr.f32.mxu0 %v2088_v3 }
  0x10   :  { %258 = vmatpush1.msra.mxu1 %v2250_v25  ;;  %565 = vmatpush1.msra.mxu0 %v2149_v4 }
  0x11   :  { %259 = vmatprep.subr.mxu1 %v2258_v26  ;;  %566 = vmatprep.subr.mxu0 %v2157_v6 }
  0x12   :  { %260 = vmatpush1.msra.mxu1 %v2266_v27  ;;  %1812 = vmatmul.mubr.msk.f32.gmra.mxu0 %vm54_vm0, %v28_v28 }
  0x13   :  { %294 = vmatmul.mubr.f32.vlgmr.msra.gmra.mxu1 %v2088_v3  ;;  %161 = vmatprep.mubr.f32.mxu0 %v2088_v3 }
  0x14   :  { %405 = vmatprep.subr.mxu1 %v2138_v1  ;;  %453 = vmatprep.mubr.f32.mxu1 %v2088_v3 }
  0x15   :  { %406 = vmatpush1.msra.mxu1 %v2149_v4  ;;  %567 = vmatpush1.msra.mxu0 %v2166_v8 }
  0x16   :  { %407 = vmatprep.subr.mxu1 %v2157_v6  ;;  %1813 = vmatmul.mubr.msk.f32.gmra.mxu0 %vm54_vm0, %v29_v29 }
  0x17   :  { %408 = vmatpush1.msra.mxu1 %v2166_v8  ;;  %167 = vmatprep.mubr.f32.mxu0 %v2088_v3 }
  0x18   :  { %409 = vmatprep.subr.mxu1 %v2175_v10  ;;  %568 = vmatprep.subr.mxu0 %v2175_v10 }
  0x19   :  { %410 = vmatpush1.msra.mxu1 %v2183_v12  ;;  %569 = vmatpush1.msra.mxu0 %v2183_v12 }
  0x1a   :  { %411 = vmatprep.subr.mxu1 %v2192_v14  ;;  %1814 = vmatmul.mubr.msk.f32.gmra.mxu0 %vm54_vm0, %v30_v30 }
  0x1b   :  { %412 = vmatpush1.msra.mxu1 %v2201_v16  ;;  %173 = vmatprep.mubr.f32.mxu0 %v2088_v3 }
  0x1c   :  { %413 = vmatprep.subr.mxu1 %v2210_v18  ;;  %570 = vmatprep.subr.mxu0 %v2192_v14 }
  0x1d   :  { %414 = vmatpush1.msra.mxu1 %v2216_v19  ;;  %571 = vmatpush1.msra.mxu0 %v2201_v16 }
  0x1e   :  { %415 = vmatprep.subr.mxu1 %v2222_v20  ;;  %1815 = vmatmul.mubr.msk.f32.gmra.mxu0 %vm54_vm0, %v31_v31 }
  0x1f   :  { %416 = vmatpush1.msra.mxu1 %v2229_v21  ;;  %179 = vmatprep.mubr.f32.mxu0 %v2088_v3 }
  0x20   :  { %417 = vmatprep.subr.mxu1 %v2239_v23  ;;  %572 = vmatprep.subr.mxu0 %v2210_v18 }
  0x21   :  { %418 = vmatpush1.msra.mxu1 %v2250_v25  ;;  %573 = vmatpush1.msra.mxu0 %v2216_v19 }
  0x22   :  { %419 = vmatprep.subr.mxu1 %v2258_v26  ;;  %1816 = vmatmul.mubr.msk.f32.gmra.mxu0 %vm54_vm0, %v32_v32 }
  0x23   :  { %420 = vmatpush1.msra.mxu1 %v2266_v27  ;;  %185 = vmatprep.mubr.f32.mxu0 %v2088_v3 }
  0x24   :  { %574 = vmatprep.subr.mxu0 %v2222_v20  ;;  %723 = vmatprep.subr.mxu1 %v2138_v1 }
  0x25   :  { %575 = vmatpush1.msra.mxu0 %v2229_v21 }
  0x26   :  { %576 = vmatprep.subr.mxu0 %v2239_v23  ;;  %1817 = vmatmul.mubr.msk.f32.gmra.mxu0 %vm54_vm0, %v33_v33 }
  0x27   :  { %577 = vmatpush1.msra.mxu0 %v2250_v25  ;;  %612 = vmatprep.mubr.f32.mxu0 %v2088_v3 }
  0x28   :  { %578 = vmatprep.subr.mxu0 %v2258_v26 }
  0x29   :  { %579 = vmatpush1.msra.mxu0 %v2266_v27 }
  0x2a   :  { %882 = vmatprep.subr.mxu0 %v2138_v1 }
  0x7e   :  { %v2346_v48 = vpop.permute.xlu0 %316 }
  0xca   :  { %v145_v40 = vpop.f32.mrf.mxu0 }
  0xcb   :  { %v2340_v41 = vadd.f32 %v145_v40, %v47_v38 }
  0xcc   :  { %v147_v43 = vpop.f32.mrf.mxu0 }
  0xcd   :  { %192 = vst [vmem:[#allocation2] sm:$0xff] %v2340_v41  ;;  %v148_v44 = vadd.f32 %v147_v43, %v51_v42 }
  0xce   :  { %v151_v45 = vpop.f32.mrf.mxu0 }
  0xcf   :  { %194 = vst.msk [vmem:[#allocation2 + $0x8] sm:$0xff] %vm193_vm1, %v148_v44  ;;  %v2344_v46 = vadd.f32 %v151_v45, %v47_v38 }
  0xd0   :  { %v153_v47 = vpop.f32.mrf.mxu0 }
  0xd1   :  { %195 = vst [vmem:[#allocation2 + $0x10] sm:$0xff] %v2344_v46  ;;  %v154_v49 = vadd.f32 %v153_v47, %v51_v42 }
  0xd2   :  { %v157_v50 = vpop.f32.mrf.mxu0 }
  0xd3   :  { %v295_v51 = vpop.f32.mrf.mxu1  ;;  %196 = vst.msk [vmem:[#allocation2 + $0x18] sm:$0xff] %vm193_vm1, %v154_v49  ;;  %v2350_v52 = vadd.f32 %v157_v50, %v47_v38 }
  0xd4   :  { %v319_v53 = vadd.f32 %v2346_v48, %v295_v51  ;;  %v159_v54 = vpop.f32.mrf.mxu0  ;;  %v304_v33 = vadd.f32 %v295_v51, %v2340_v41 }
  0xd5   :  { %v2353_v55 = vpop.f32.mrf.mxu1  ;;  %v160_v56 = vadd.f32 %v159_v54, %v51_v42 }
  0xd6   :  { %321 = vrot.lane.b32.xlu0 %v319_v53, %s2089_s27  ;;  %v354_v57 = vadd.f32 %v2244_v24, %v2353_v55  ;;  %v163_v58 = vpop.f32.mrf.mxu0  ;;  %v1818_v34 = vmul.f32 -1.442695, %v304_v33 }
  0xd7   :  { %198 = vst.msk [vmem:[#allocation2 + $0x28] sm:$0xff] %vm193_vm1, %v160_v56  ;;  %v2359_v59 = vadd.f32 %v163_v58, %v47_v38 }
  0xd8   :  { %356 = vrot.lane.b32.xlu1 %v354_v57, %s2089_s27  ;;  %v165_v60 = vpop.f32.mrf.mxu0  ;;  %1943 = vpow2.f32 %v1818_v34 }
  0xd9   :  { %v166_v61 = vadd.f32 %v165_v60, %v51_v42 }
  0xda   :  { %v169_v62 = vpop.f32.mrf.mxu0 }
  0xdb   :  { %200 = vst.msk [vmem:[#allocation2 + $0x38] sm:$0xff] %vm193_vm1, %v166_v61  ;;  %v2363_v63 = vadd.f32 %v169_v62, %v47_v38 }
  0xdc   :  { %v171_v0 = vpop.f32.mrf.mxu0 }
  0xdd   :  { %v172_v2 = vadd.f32 %v171_v0, %v51_v42 }
  0xde   :  { %v175_v5 = vpop.f32.mrf.mxu0 }
  0xdf   :  { %202 = vst.msk [vmem:[#allocation2 + $0x48] sm:$0xff] %vm193_vm1, %v172_v2  ;;  %v2366_v7 = vadd.f32 %v175_v5, %v47_v38 }
  0xe0   :  { %v177_v9 = vpop.f32.mrf.mxu0 }
  0xe1   :  { %v178_v11 = vadd.f32 %v177_v9, %v51_v42 }
  0xe2   :  { %v181_v13 = vpop.f32.mrf.mxu0 }
  0xe3   :  { %204 = vst.msk [vmem:[#allocation2 + $0x58] sm:$0xff] %vm193_vm1, %v178_v11  ;;  %v2369_v15 = vadd.f32 %v181_v13, %v47_v38 }
  0xe4   :  { %v183_v17 = vpop.f32.mrf.mxu0 }
  0xe5   :  { %v184_v22 = vadd.f32 %v183_v17, %v51_v42  ;;  %v1944_v36 = vpop.eup %1943 }
  0xe6   :  { %v187_v28 = vpop.f32.mrf.mxu0  ;;  %v308_v39 = vadd.f32 1.0, %v1944_v36 }
  0xe7   :  { %206 = vst.msk [vmem:[#allocation2 + $0x68] sm:$0xff] %vm193_vm1, %v184_v22  ;;  %v188_v29 = vadd.f32 %v187_v28, %v47_v38 }
  0xe8   :  { %v189_v30 = vpop.f32.mrf.mxu0 }
  0xe9   :  { %207 = vst [vmem:[#allocation2 + $0x70] sm:$0xff] %v188_v29  ;;  %v190_v31 = vadd.f32 %v189_v30, %v51_v42  ;;  %v339_v32 = vadd.f32 %v295_v51, %v188_v29 }
  0xeb   :  { %208 = vst.msk [vmem:[#allocation2 + $0x78] sm:$0xff] %vm193_vm1, %v190_v31  ;;  %v1820_v35 = vmul.f32 -1.442695, %v339_v32 }
  0xed   :  { %1945 = vpow2.f32 %v1820_v35 }
  0xee   :  { %1947 = vrcp.f32 %v308_v39 }
  0xf2   :  { %v303_v51 = vld [vmem:[#allocation2 + $0x78] sm:$0xff] }
  0xf3   :  { %v346_v58 = vadd.f32 %v303_v51, %v2353_v55 }
  0xf5   :  { %v1821_v60 = vmul.f32 -1.442695, %v346_v58 }
  0xfa   :  { %v1946_v37 = vpop.eup %1945 }
  0xfb   :  { %v343_v40 = vadd.f32 1.0, %v1946_v37  ;;  %v1948_v43 = vpop.eup %1947 }
  0xfc   :  { %v331_v0 = vsub.f32 1.0, %v1948_v43  ;;  %v337_v5 = vmul.f32 0.0, %v1948_v43 }
  0xfd   :  { %1949 = vrcp.f32 %v343_v40 }
 0x10a   :  { %v1950_v45 = vpop.eup %1949 }
 0x148   :  { %v322_v38 = vpop.permute.xlu0 %321 }
 0x149   :  { %v324_v44 = vmul.f32 %v1948_v43, %v322_v38 }
 0x14a   :  { %v357_v42 = vpop.permute.xlu1 %356 }
 0x14b   :  { %v359_v47 = vmul.f32 %v1950_v45, %v357_v42  ;;  %326 = vrot.lane.b32.xlu1 %v324_v44, %s2089_s27 }
 0x14d   :  { %361 = vrot.lane.b32.xlu0 %v359_v47, %s2089_s27 }
 0x1bd   :  { %v327_v49 = vpop.permute.xlu1 %326 }
 0x1be   :  { %v329_v50 = vadd.f32 %v327_v49, %v2340_v41 }
 0x1bf   :  { %v362_v53 = vpop.permute.xlu0 %361 }
 0x1c0   :  { %1951 = vtanh.f32 %v329_v50  ;;  %v364_v54 = vadd.f32 %v362_v53, %v303_v51 }
 0x1c2   :  { %1953 = vtanh.f32 %v364_v54 }
 0x1c3   :  { %1955 = vpow2.f32 %v1821_v60 }
 0x1cd   :  { %v1952_v56 = vpop.eup %1951 }
 0x1ce   :  { %333 = vrot.lane.b32.xlu1 %v1952_v56, %s2090_s3 }
 0x1cf   :  { %v1954_v57 = vpop.eup %1953 }
 0x1d0   :  { %368 = vrot.lane.b32.xlu0 %v1954_v57, %s2090_s3  ;;  %v1956_v61 = vpop.eup %1955  ;;  %v464_v57 = vld [vmem:[#allocation2 + $0x68] sm:$0xff] }
 0x1d1   :  { %v350_v62 = vadd.f32 1.0, %v1956_v61 }
 0x1d3   :  { %1957 = vrcp.f32 %v350_v62 }
 0x1e0   :  { %v1958_v41 = vpop.eup %1957 }
 0x1e1   :  { %v366_v11 = vsub.f32 1.0, %v1958_v41  ;;  %v372_v22 = vmul.f32 0.0, %v1958_v41 }
 0x240   :  { %v334_v2 = vpop.permute.xlu1 %333 }
 0x241   :  { %v336_v9 = vmul.f32 %v334_v2, %v331_v0 }
 0x242   :  { %v369_v13 = vpop.permute.xlu0 %368 }
 0x243   :  { %v338_v17 = vadd.f32 %v337_v5, %v336_v9  ;;  %v371_v28 = vmul.f32 %v369_v13, %v366_v11 }
 0x245   :  { %v373_v29 = vadd.f32 %v372_v22, %v371_v28  ;;  %375 = vrot.lane.b32.xlu1 %v338_v17, %s2090_s3 }
 0x247   :  { %380 = vst.msk [vmem:[#allocation4 + $0x38] sm:$0xff] %vm54_vm0, %v373_v29  ;;  %382 = vrot.lane.b32.xlu0 %v373_v29, %s2091_s21 }
 0x2b7   :  { %v376_v55 = vpop.permute.xlu1 %375 }
 0x2b8   :  { %378 = vst.msk [vmem:[#allocation3] sm:$0xff] %vm54_vm0, %v376_v55 }
 0x2b9   :  { %v383_v30 = vpop.permute.xlu0 %382 }
 0x2ba   :  { %v385_v31 = vsel %vm54_vm0, %v376_v55, %v383_v30 }
 0x2bb   :  { %1822 = vmatmul.mubr.msk.f32.vlgmr.msra.gmra.mxu1 %vm193_vm1, %v385_v31 }
 0x2bc   :  { %724 = vmatpush1.msra.mxu1 %v2149_v4  ;;  %771 = vmatprep.mubr.f32.mxu1 %v2088_v3 }
 0x2bd   :  { %725 = vmatprep.subr.mxu1 %v2157_v6 }
 0x2be   :  { %726 = vmatpush1.msra.mxu1 %v2166_v8 }
 0x2bf   :  { %727 = vmatprep.subr.mxu1 %v2175_v10 }
 0x2c0   :  { %728 = vmatpush1.msra.mxu1 %v2183_v12 }
 0x2c1   :  { %729 = vmatprep.subr.mxu1 %v2192_v14 }
 0x2c2   :  { %730 = vmatpush1.msra.mxu1 %v2201_v16 }
 0x2c3   :  { %731 = vmatprep.subr.mxu1 %v2210_v18 }
 0x2c4   :  { %732 = vmatpush1.msra.mxu1 %v2216_v19 }
 0x2c5   :  { %733 = vmatprep.subr.mxu1 %v2222_v20 }
 0x2c6   :  { %734 = vmatpush1.msra.mxu1 %v2229_v21 }
 0x2c7   :  { %735 = vmatprep.subr.mxu1 %v2239_v23 }
 0x2c8   :  { %736 = vmatpush1.msra.mxu1 %v2250_v25 }
 0x2c9   :  { %737 = vmatprep.subr.mxu1 %v2258_v26 }
 0x2ca   :  { %738 = vmatpush1.msra.mxu1 %v2266_v27 }
 0x2cb   :  { %1039 = vmatprep.subr.mxu1 %v2138_v1 }
 0x37b   :  { %v455_v32 = vpop.f32.mrf.mxu1 }
 0x37c   :  { %v472_v33 = vadd.f32 %v455_v32, %v2346_v48  ;;  %v465_v36 = vadd.f32 %v455_v32, %v2344_v46  ;;  %v495_v37 = vadd.f32 %v455_v32, %v2369_v15 }
 0x37d   :  { %v457_v34 = vpop.f32.mrf.mxu1 }
 0x37e   :  { %v509_v35 = vadd.f32 %v2244_v24, %v457_v34  ;;  %474 = vrot.lane.b32.xlu1 %v472_v33, %s2089_s27  ;;  %v1823_v39 = vmul.f32 -1.442695, %v465_v36  ;;  %v1824_v40 = vmul.f32 -1.442695, %v495_v37  ;;  %v502_v41 = vadd.f32 %v464_v57, %v457_v34 }
 0x380   :  { %511 = vrot.lane.b32.xlu0 %v509_v35, %s2089_s27  ;;  %1959 = vpow2.f32 %v1823_v39  ;;  %v1825_v0 = vmul.f32 -1.442695, %v502_v41  ;;  %v623_v41 = vld [vmem:[#allocation2 + $0x58] sm:$0xff] }
 0x381   :  { %1961 = vpow2.f32 %v1824_v40 }
 0x38d   :  { %v1960_v43 = vpop.eup %1959 }
 0x38e   :  { %v1962_v38 = vpop.eup %1961  ;;  %v469_v44 = vadd.f32 1.0, %v1960_v43 }
 0x38f   :  { %v499_v45 = vadd.f32 1.0, %v1962_v38 }
 0x390   :  { %1963 = vrcp.f32 %v469_v44 }
 0x391   :  { %1965 = vrcp.f32 %v499_v45 }
 0x39d   :  { %v1964_v42 = vpop.eup %1963 }
 0x39e   :  { %v1966_v50 = vpop.eup %1965  ;;  %v484_v11 = vsub.f32 1.0, %v1964_v42 }
 0x3f0   :  { %v475_v47 = vpop.permute.xlu1 %474 }
 0x3f1   :  { %v477_v49 = vmul.f32 %v1964_v42, %v475_v47 }
 0x3f2   :  { %v512_v51 = vpop.permute.xlu0 %511 }
 0x3f3   :  { %v514_v53 = vmul.f32 %v1966_v50, %v512_v51  ;;  %479 = vrot.lane.b32.xlu1 %v477_v49, %s2089_s27 }
 0x3f5   :  { %516 = vrot.lane.b32.xlu0 %v514_v53, %s2089_s27 }
 0x3f9   :  { %490 = vrot.lane.b32.xlu0 %v385_v31, %s2091_s21 }
 0x3fd   :  { %527 = vrot.lane.b32.xlu0 %v385_v31, %s2090_s3 }
 0x465   :  { %v480_v54 = vpop.permute.xlu1 %479 }
 0x466   :  { %v482_v56 = vadd.f32 %v480_v54, %v2344_v46 }
 0x467   :  { %v517_v58 = vpop.permute.xlu0 %516 }
 0x468   :  { %1967 = vtanh.f32 %v482_v56  ;;  %v519_v60 = vadd.f32 %v517_v58, %v464_v57 }
 0x46a   :  { %1969 = vtanh.f32 %v519_v60 }
 0x46b   :  { %1971 = vpow2.f32 %v1825_v0  ;;  %v491_v9 = vpop.permute.xlu0 %490 }
 0x46c   :  { %v493_v17 = vmul.f32 %v1964_v42, %v491_v9 }
 0x46f   :  { %v528_v28 = vpop.permute.xlu0 %527 }
 0x475   :  { %v1968_v61 = vpop.eup %1967 }
 0x476   :  { %486 = vrot.lane.b32.xlu1 %v1968_v61, %s2090_s3 }
 0x477   :  { %v1970_v62 = vpop.eup %1969 }
 0x478   :  { %v1972_v2 = vpop.eup %1971 }
 0x479   :  { %v506_v5 = vadd.f32 1.0, %v1972_v2 }
 0x47a   :  { %523 = vrot.lane.b32.xlu1 %v1970_v62, %s2090_s3 }
 0x47b   :  { %1973 = vrcp.f32 %v506_v5 }
 0x488   :  { %v1974_v46 = vpop.eup %1973 }
 0x489   :  { %v521_v55 = vsub.f32 1.0, %v1974_v46  ;;  %v530_v31 = vmul.f32 %v1974_v46, %v528_v28 }
 0x4e8   :  { %v487_v13 = vpop.permute.xlu1 %486 }
 0x4e9   :  { %v489_v22 = vmul.f32 %v487_v13, %v484_v11 }
 0x4eb   :  { %v494_v29 = vadd.f32 %v493_v17, %v489_v22 }
 0x4ec   :  { %v524_v30 = vpop.permute.xlu1 %523 }
 0x4ed   :  { %v526_v32 = vmul.f32 %v524_v30, %v521_v55  ;;  %533 = vrot.lane.b32.xlu1 %v494_v29, %s2090_s3 }
 0x4ef   :  { %v531_v33 = vadd.f32 %v530_v31, %v526_v32 }
 0x4f1   :  { %539 = vst.msk [vmem:[#allocation4 + $0x30] sm:$0xff] %vm54_vm0, %v531_v33  ;;  %541 = vrot.lane.b32.xlu0 %v531_v33, %s2091_s21 }
 0x55f   :  { %v534_v34 = vpop.permute.xlu1 %533 }
 0x560   :  { %537 = vst.msk [vmem:[#allocation3 + $0x8] sm:$0xff] %vm54_vm0, %v534_v34 }
 0x563   :  { %v542_v35 = vpop.permute.xlu0 %541 }
 0x564   :  { %v544_v36 = vsel %vm54_vm0, %v534_v34, %v542_v35 }
 0x565   :  { %1826 = vmatmul.mubr.msk.f32.vlgmr.msra.gmra.mxu0 %vm193_vm1, %v544_v36 }
 0x566   :  { %883 = vmatpush1.msra.mxu0 %v2149_v4  ;;  %930 = vmatprep.mubr.f32.mxu0 %v2088_v3 }
 0x567   :  { %884 = vmatprep.subr.mxu0 %v2157_v6 }
 0x568   :  { %885 = vmatpush1.msra.mxu0 %v2166_v8 }
 0x569   :  { %886 = vmatprep.subr.mxu0 %v2175_v10 }
 0x56a   :  { %887 = vmatpush1.msra.mxu0 %v2183_v12 }
 0x56b   :  { %888 = vmatprep.subr.mxu0 %v2192_v14 }
 0x56c   :  { %889 = vmatpush1.msra.mxu0 %v2201_v16 }
 0x56d   :  { %890 = vmatprep.subr.mxu0 %v2210_v18 }
 0x56e   :  { %891 = vmatpush1.msra.mxu0 %v2216_v19 }
 0x56f   :  { %892 = vmatprep.subr.mxu0 %v2222_v20 }
 0x570   :  { %893 = vmatpush1.msra.mxu0 %v2229_v21 }
 0x571   :  { %894 = vmatprep.subr.mxu0 %v2239_v23 }
 0x572   :  { %895 = vmatpush1.msra.mxu0 %v2250_v25 }
 0x573   :  { %896 = vmatprep.subr.mxu0 %v2258_v26 }
 0x574   :  { %897 = vmatpush1.msra.mxu0 %v2266_v27 }
 0x575   :  { %1196 = vmatprep.subr.mxu0 %v2138_v1 }
 0x625   :  { %v614_v37 = vpop.f32.mrf.mxu0 }
 0x626   :  { %v631_v39 = vadd.f32 %v614_v37, %v2346_v48  ;;  %v624_v38 = vadd.f32 %v614_v37, %v2350_v52  ;;  %v654_v44 = vadd.f32 %v614_v37, %v2366_v7 }
 0x627   :  { %v616_v40 = vpop.f32.mrf.mxu0 }
 0x628   :  { %v668_v43 = vadd.f32 %v2244_v24, %v616_v40  ;;  %633 = vrot.lane.b32.xlu1 %v631_v39, %s2089_s27  ;;  %v1827_v45 = vmul.f32 -1.442695, %v624_v38  ;;  %v1828_v42 = vmul.f32 -1.442695, %v654_v44  ;;  %v661_v11 = vadd.f32 %v623_v41, %v616_v40 }
 0x62a   :  { %670 = vrot.lane.b32.xlu0 %v668_v43, %s2089_s27  ;;  %1975 = vpow2.f32 %v1827_v45  ;;  %v1829_v46 = vmul.f32 -1.442695, %v661_v11 }
 0x62b   :  { %1977 = vpow2.f32 %v1828_v42 }
 0x637   :  { %v1976_v47 = vpop.eup %1975 }
 0x638   :  { %v1978_v49 = vpop.eup %1977  ;;  %v628_v50 = vadd.f32 1.0, %v1976_v47 }
 0x639   :  { %v658_v51 = vadd.f32 1.0, %v1978_v49 }
 0x63a   :  { %1979 = vrcp.f32 %v628_v50 }
 0x63b   :  { %1981 = vrcp.f32 %v658_v51 }
 0x647   :  { %v1980_v53 = vpop.eup %1979 }
 0x648   :  { %v1982_v57 = vpop.eup %1981  ;;  %v643_v28 = vsub.f32 1.0, %v1980_v53 }
 0x69a   :  { %v634_v54 = vpop.permute.xlu1 %633 }
 0x69b   :  { %v636_v56 = vmul.f32 %v1980_v53, %v634_v54 }
 0x69c   :  { %v671_v58 = vpop.permute.xlu0 %670 }
 0x69d   :  { %v673_v60 = vmul.f32 %v1982_v57, %v671_v58  ;;  %638 = vrot.lane.b32.xlu1 %v636_v56, %s2089_s27 }
 0x69f   :  { %675 = vrot.lane.b32.xlu0 %v673_v60, %s2089_s27 }
 0x6a3   :  { %649 = vrot.lane.b32.xlu0 %v544_v36, %s2091_s21 }
 0x6a7   :  { %686 = vrot.lane.b32.xlu0 %v544_v36, %s2090_s3 }
 0x70f   :  { %v639_v61 = vpop.permute.xlu1 %638 }
 0x710   :  { %v641_v62 = vadd.f32 %v639_v61, %v2350_v52 }
 0x711   :  { %v676_v0 = vpop.permute.xlu0 %675 }
 0x712   :  { %1983 = vtanh.f32 %v641_v62  ;;  %v678_v2 = vadd.f32 %v676_v0, %v623_v41 }
 0x714   :  { %1985 = vtanh.f32 %v678_v2 }
 0x715   :  { %1987 = vpow2.f32 %v1829_v46  ;;  %v650_v22 = vpop.permute.xlu0 %649 }
 0x716   :  { %v652_v30 = vmul.f32 %v1980_v53, %v650_v22 }
 0x719   :  { %v687_v32 = vpop.permute.xlu0 %686 }
 0x71f   :  { %v1984_v5 = vpop.eup %1983 }
 0x720   :  { %645 = vrot.lane.b32.xlu1 %v1984_v5, %s2090_s3 }
 0x721   :  { %v1986_v9 = vpop.eup %1985 }
 0x722   :  { %v1988_v13 = vpop.eup %1987 }
 0x723   :  { %v665_v17 = vadd.f32 1.0, %v1988_v13 }
 0x724   :  { %682 = vrot.lane.b32.xlu1 %v1986_v9, %s2090_s3  ;;  %v782_v9 = vld [vmem:[#allocation2 + $0x48] sm:$0xff] }
 0x725   :  { %1989 = vrcp.f32 %v665_v17 }
 0x732   :  { %v1990_v29 = vpop.eup %1989 }
 0x733   :  { %v680_v34 = vsub.f32 1.0, %v1990_v29  ;;  %v689_v36 = vmul.f32 %v1990_v29, %v687_v32 }
 0x792   :  { %v646_v55 = vpop.permute.xlu1 %645 }
 0x793   :  { %v648_v31 = vmul.f32 %v646_v55, %v643_v28 }
 0x795   :  { %v653_v33 = vadd.f32 %v652_v30, %v648_v31 }
 0x796   :  { %v683_v35 = vpop.permute.xlu1 %682 }
 0x797   :  { %v685_v37 = vmul.f32 %v683_v35, %v680_v34  ;;  %692 = vrot.lane.b32.xlu1 %v653_v33, %s2090_s3 }
 0x799   :  { %v690_v39 = vadd.f32 %v689_v36, %v685_v37 }
 0x79b   :  { %698 = vst.msk [vmem:[#allocation4 + $0x28] sm:$0xff] %vm54_vm0, %v690_v39  ;;  %700 = vrot.lane.b32.xlu0 %v690_v39, %s2091_s21 }
 0x809   :  { %v693_v40 = vpop.permute.xlu1 %692 }
 0x80a   :  { %696 = vst.msk [vmem:[#allocation3 + $0x10] sm:$0xff] %vm54_vm0, %v693_v40 }
 0x80d   :  { %v701_v43 = vpop.permute.xlu0 %700 }
 0x80e   :  { %v703_v38 = vsel %vm54_vm0, %v693_v40, %v701_v43 }
 0x80f   :  { %1830 = vmatmul.mubr.msk.f32.vlgmr.msra.gmra.mxu1 %vm193_vm1, %v703_v38 }
 0x810   :  { %1040 = vmatpush1.msra.mxu1 %v2149_v4  ;;  %1087 = vmatprep.mubr.f32.mxu1 %v2088_v3 }
 0x811   :  { %1041 = vmatprep.subr.mxu1 %v2157_v6 }
 0x812   :  { %1042 = vmatpush1.msra.mxu1 %v2166_v8 }
 0x813   :  { %1043 = vmatprep.subr.mxu1 %v2175_v10 }
 0x814   :  { %1044 = vmatpush1.msra.mxu1 %v2183_v12 }
 0x815   :  { %1045 = vmatprep.subr.mxu1 %v2192_v14 }
 0x816   :  { %1046 = vmatpush1.msra.mxu1 %v2201_v16 }
 0x817   :  { %1047 = vmatprep.subr.mxu1 %v2210_v18 }
 0x818   :  { %1048 = vmatpush1.msra.mxu1 %v2216_v19 }
 0x819   :  { %1049 = vmatprep.subr.mxu1 %v2222_v20 }
 0x81a   :  { %1050 = vmatpush1.msra.mxu1 %v2229_v21 }
 0x81b   :  { %1051 = vmatprep.subr.mxu1 %v2239_v23 }
 0x81c   :  { %1052 = vmatpush1.msra.mxu1 %v2250_v25 }
 0x81d   :  { %1053 = vmatprep.subr.mxu1 %v2258_v26 }
 0x81e   :  { %1054 = vmatpush1.msra.mxu1 %v2266_v27 }
 0x81f   :  { %1353 = vmatprep.subr.mxu1 %v2138_v1 }
 0x8cf   :  { %v773_v44 = vpop.f32.mrf.mxu1 }
 0x8d0   :  { %v790_v45 = vadd.f32 %v773_v44, %v2346_v48  ;;  %v783_v49 = vadd.f32 %v773_v44, %v2359_v59  ;;  %v813_v50 = vadd.f32 %v773_v44, %v2363_v63 }
 0x8d1   :  { %v775_v42 = vpop.f32.mrf.mxu1 }
 0x8d2   :  { %v827_v47 = vadd.f32 %v2244_v24, %v775_v42  ;;  %792 = vrot.lane.b32.xlu1 %v790_v45, %s2089_s27  ;;  %v1831_v51 = vmul.f32 -1.442695, %v783_v49  ;;  %v1832_v53 = vmul.f32 -1.442695, %v813_v50  ;;  %v820_v22 = vadd.f32 %v782_v9, %v775_v42 }
 0x8d4   :  { %829 = vrot.lane.b32.xlu0 %v827_v47, %s2089_s27  ;;  %1991 = vpow2.f32 %v1831_v51  ;;  %v1833_v28 = vmul.f32 -1.442695, %v820_v22 }
 0x8d5   :  { %1993 = vpow2.f32 %v1832_v53  ;;  %v939_v53 = vld [vmem:[#allocation2 + $0x38] sm:$0xff] }
 0x8e1   :  { %v1992_v54 = vpop.eup %1991 }
 0x8e2   :  { %v1994_v1 = vpop.eup %1993  ;;  %v787_v56 = vadd.f32 1.0, %v1992_v54 }
 0x8e3   :  { %v817_v57 = vadd.f32 1.0, %v1994_v1 }
 0x8e4   :  { %1995 = vrcp.f32 %v787_v56 }
 0x8e5   :  { %1997 = vrcp.f32 %v817_v57 }
 0x8f1   :  { %v1996_v58 = vpop.eup %1995 }
 0x8f2   :  { %v1998_v62 = vpop.eup %1997  ;;  %v802_v31 = vsub.f32 1.0, %v1996_v58 }
 0x944   :  { %v793_v60 = vpop.permute.xlu1 %792 }
 0x945   :  { %v795_v61 = vmul.f32 %v1996_v58, %v793_v60 }
 0x946   :  { %v830_v41 = vpop.permute.xlu0 %829 }
 0x947   :  { %v832_v0 = vmul.f32 %v1998_v62, %v830_v41  ;;  %797 = vrot.lane.b32.xlu1 %v795_v61, %s2089_s27 }
 0x949   :  { %834 = vrot.lane.b32.xlu0 %v832_v0, %s2089_s27 }
 0x94d   :  { %808 = vrot.lane.b32.xlu0 %v703_v38, %s2091_s21 }
 0x951   :  { %845 = vrot.lane.b32.xlu0 %v703_v38, %s2090_s3 }
 0x9b9   :  { %v798_v2 = vpop.permute.xlu1 %797 }
 0x9ba   :  { %v800_v5 = vadd.f32 %v798_v2, %v2359_v59 }
 0x9bb   :  { %v835_v11 = vpop.permute.xlu0 %834 }
 0x9bc   :  { %1999 = vtanh.f32 %v800_v5  ;;  %v837_v46 = vadd.f32 %v835_v11, %v782_v9 }
 0x9be   :  { %2001 = vtanh.f32 %v837_v46 }
 0x9bf   :  { %2003 = vpow2.f32 %v1833_v28  ;;  %v809_v30 = vpop.permute.xlu0 %808 }
 0x9c0   :  { %v811_v34 = vmul.f32 %v1996_v58, %v809_v30 }
 0x9c3   :  { %v846_v36 = vpop.permute.xlu0 %845 }
 0x9c9   :  { %v2000_v13 = vpop.eup %1999 }
 0x9ca   :  { %804 = vrot.lane.b32.xlu1 %v2000_v13, %s2090_s3 }
 0x9cb   :  { %v2002_v17 = vpop.eup %2001 }
 0x9cc   :  { %v2004_v29 = vpop.eup %2003 }
 0x9cd   :  { %v824_v55 = vadd.f32 1.0, %v2004_v29 }
 0x9ce   :  { %841 = vrot.lane.b32.xlu1 %v2002_v17, %s2090_s3 }
 0x9cf   :  { %2005 = vrcp.f32 %v824_v55 }
 0x9dc   :  { %v2006_v32 = vpop.eup %2005 }
 0x9dd   :  { %v839_v39 = vsub.f32 1.0, %v2006_v32  ;;  %v848_v43 = vmul.f32 %v2006_v32, %v846_v36  ;;  %v2071_v32 = vld [vmem:[%s2722_s2 + $0x70] sm:$0xff] }
 0x9de   :  { %v2075_v36 = vld [vmem:[%s2722_s2 + $0x50] sm:$0xff] }
 0xa3c   :  { %v805_v33 = vpop.permute.xlu1 %804 }
 0xa3d   :  { %v807_v35 = vmul.f32 %v805_v33, %v802_v31  ;;  %v2072_v33 = vld [vmem:[%s2722_s2 + $0x68] sm:$0xff] }
 0xa3f   :  { %v812_v37 = vadd.f32 %v811_v34, %v807_v35  ;;  %v2073_v34 = vld [vmem:[%s2722_s2 + $0x60] sm:$0xff]  ;;  %v2074_v35 = vld [vmem:[%s2722_s2 + $0x58] sm:$0xff] }
 0xa40   :  { %v842_v40 = vpop.permute.xlu1 %841 }
 0xa41   :  { %v844_v38 = vmul.f32 %v842_v40, %v839_v39  ;;  %851 = vrot.lane.b32.xlu1 %v812_v37, %s2090_s3  ;;  %v2077_v37 = vld [vmem:[%s2722_s2 + $0x40] sm:$0xff]  ;;  %v2078_v39 = vld [vmem:[%s2722_s2 + $0x38] sm:$0xff]  ;;  %v2079_v40 = vld [vmem:[%s2722_s2 + $0x30] sm:$0xff] }
 0xa43   :  { %v849_v44 = vadd.f32 %v848_v43, %v844_v38  ;;  %v2080_v43 = vld [vmem:[%s2722_s2 + $0x28] sm:$0xff]  ;;  %v2081_v38 = vld [vmem:[%s2722_s2 + $0x20] sm:$0xff] }
 0xa45   :  { %857 = vst.msk [vmem:[#allocation4 + $0x20] sm:$0xff] %vm54_vm0, %v849_v44  ;;  %859 = vrot.lane.b32.xlu0 %v849_v44, %s2091_s21  ;;  %v2082_v44 = vld [vmem:[%s2722_s2 + $0x18] sm:$0xff] }
 0xab3   :  { %v852_v45 = vpop.permute.xlu1 %851 }
 0xab4   :  { %855 = vst.msk [vmem:[#allocation3 + $0x18] sm:$0xff] %vm54_vm0, %v852_v45 }
 0xab7   :  { %v860_v42 = vpop.permute.xlu0 %859 }
 0xab8   :  { %v862_v47 = vsel %vm54_vm0, %v852_v45, %v860_v42  ;;  %v2083_v45 = vld [vmem:[%s2722_s2 + $0x10] sm:$0xff]  ;;  %v2084_v42 = vld [vmem:[%s2722_s2 + $0x8] sm:$0xff] }
 0xab9   :  { %1834 = vmatmul.mubr.msk.f32.vlgmr.msra.gmra.mxu0 %vm193_vm1, %v862_v47 }
 0xaba   :  { %1197 = vmatpush1.msra.mxu0 %v2149_v4  ;;  %1244 = vmatprep.mubr.f32.mxu0 %v2088_v3 }
 0xabb   :  { %1198 = vmatprep.subr.mxu0 %v2157_v6 }
 0xabc   :  { %1199 = vmatpush1.msra.mxu0 %v2166_v8 }
 0xabd   :  { %1200 = vmatprep.subr.mxu0 %v2175_v10 }
 0xabe   :  { %1201 = vmatpush1.msra.mxu0 %v2183_v12 }
 0xabf   :  { %1202 = vmatprep.subr.mxu0 %v2192_v14 }
 0xac0   :  { %1203 = vmatpush1.msra.mxu0 %v2201_v16 }
 0xac1   :  { %1204 = vmatprep.subr.mxu0 %v2210_v18 }
 0xac2   :  { %1205 = vmatpush1.msra.mxu0 %v2216_v19 }
 0xac3   :  { %1206 = vmatprep.subr.mxu0 %v2222_v20 }
 0xac4   :  { %1207 = vmatpush1.msra.mxu0 %v2229_v21 }
 0xac5   :  { %1208 = vmatprep.subr.mxu0 %v2239_v23 }
 0xac6   :  { %1209 = vmatpush1.msra.mxu0 %v2250_v25 }
 0xac7   :  { %1210 = vmatprep.subr.mxu0 %v2258_v26 }
 0xac8   :  { %1211 = vmatpush1.msra.mxu0 %v2266_v27 }
 0xb79   :  { %v932_v4 = vpop.f32.mrf.mxu0 }
 0xb7a   :  { %v947_v6 = vadd.f32 %v932_v4, %v2346_v48  ;;  %v940_v12 = vadd.f32 %v932_v4, %v2363_v63  ;;  %v970_v14 = vadd.f32 %v932_v4, %v2359_v59 }
 0xb7b   :  { %v934_v8 = vpop.f32.mrf.mxu0 }
 0xb7c   :  { %v984_v10 = vadd.f32 %v2244_v24, %v934_v8  ;;  %949 = vrot.lane.b32.xlu1 %v947_v6, %s2089_s27  ;;  %v1835_v16 = vmul.f32 -1.442695, %v940_v12  ;;  %v1836_v18 = vmul.f32 -1.442695, %v970_v14  ;;  %v977_v58 = vadd.f32 %v939_v53, %v934_v8 }
 0xb7e   :  { %986 = vrot.lane.b32.xlu0 %v984_v10, %s2089_s27  ;;  %2007 = vpow2.f32 %v1835_v16  ;;  %v1837_v60 = vmul.f32 -1.442695, %v977_v58  ;;  %v2579_v10 = vld [vmem:[%s2724_s4] ss:$0 sm:$0xff] }
 0xb7f   :  { %2009 = vpow2.f32 %v1836_v18 }
 0xb8b   :  { %v2008_v19 = vpop.eup %2007 }
 0xb8c   :  { %v2010_v20 = vpop.eup %2009  ;;  %v944_v21 = vadd.f32 1.0, %v2008_v19 }
 0xb8d   :  { %v974_v23 = vadd.f32 1.0, %v2010_v20 }
 0xb8e   :  { %2011 = vrcp.f32 %v944_v21 }
 0xb8f   :  { %2013 = vrcp.f32 %v974_v23 }
 0xb9b   :  { %v2012_v25 = vpop.eup %2011 }
 0xb9c   :  { %v2014_v27 = vpop.eup %2013  ;;  %v959_v0 = vsub.f32 1.0, %v2012_v25 }
 0xbee   :  { %v950_v24 = vpop.permute.xlu1 %949 }
 0xbef   :  { %v952_v26 = vmul.f32 %v2012_v25, %v950_v24 }
 0xbf0   :  { %v987_v49 = vpop.permute.xlu0 %986 }
 0xbf1   :  { %v989_v50 = vmul.f32 %v2014_v27, %v987_v49  ;;  %954 = vrot.lane.b32.xlu1 %v952_v26, %s2089_s27 }
 0xbf3   :  { %991 = vrot.lane.b32.xlu0 %v989_v50, %s2089_s27 }
 0xbf7   :  { %965 = vrot.lane.b32.xlu0 %v862_v47, %s2091_s21 }
 0xbfb   :  { %1002 = vrot.lane.b32.xlu0 %v862_v47, %s2090_s3  ;;  %v2085_v47 = vld [vmem:[%s2722_s2] sm:$0xff] }
 0xc63   :  { %v955_v59 = vpop.permute.xlu1 %954 }
 0xc64   :  { %v957_v51 = vadd.f32 %v955_v59, %v2363_v63 }
 0xc65   :  { %v992_v54 = vpop.permute.xlu0 %991 }
 0xc66   :  { %2015 = vtanh.f32 %v957_v51  ;;  %v994_v1 = vadd.f32 %v992_v54, %v939_v53  ;;  %v1096_v53 = vld [vmem:[#allocation2 + $0x28] sm:$0xff] }
 0xc68   :  { %2017 = vtanh.f32 %v994_v1 }
 0xc69   :  { %2019 = vpow2.f32 %v1837_v60  ;;  %v966_v41 = vpop.permute.xlu0 %965 }
 0xc6a   :  { %v968_v5 = vmul.f32 %v2012_v25, %v966_v41 }
 0xc6d   :  { %v1003_v11 = vpop.permute.xlu0 %1002 }
 0xc73   :  { %v2016_v56 = vpop.eup %2015 }
 0xc74   :  { %961 = vrot.lane.b32.xlu1 %v2016_v56, %s2090_s3 }
 0xc75   :  { %v2018_v57 = vpop.eup %2017 }
 0xc76   :  { %v2020_v61 = vpop.eup %2019 }
 0xc77   :  { %v981_v62 = vadd.f32 1.0, %v2020_v61 }
 0xc78   :  { %998 = vrot.lane.b32.xlu1 %v2018_v57, %s2090_s3 }
 0xc79   :  { %2021 = vrcp.f32 %v981_v62 }
 0xc86   :  { %v2022_v63 = vpop.eup %2021 }
 0xc87   :  { %v996_v13 = vsub.f32 1.0, %v2022_v63  ;;  %v1005_v22 = vmul.f32 %v2022_v63, %v1003_v11 }
 0xce6   :  { %v962_v2 = vpop.permute.xlu1 %961 }
 0xce7   :  { %v964_v9 = vmul.f32 %v962_v2, %v959_v0 }
 0xce9   :  { %v969_v46 = vadd.f32 %v968_v5, %v964_v9 }
 0xcea   :  { %v999_v17 = vpop.permute.xlu1 %998 }
 0xceb   :  { %v1001_v28 = vmul.f32 %v999_v17, %v996_v13  ;;  %1008 = vrot.lane.b32.xlu1 %v969_v46, %s2090_s3 }
 0xced   :  { %v1006_v29 = vadd.f32 %v1005_v22, %v1001_v28 }
 0xcef   :  { %1014 = vst.msk [vmem:[#allocation4 + $0x18] sm:$0xff] %vm54_vm0, %v1006_v29  ;;  %1016 = vrot.lane.b32.xlu0 %v1006_v29, %s2091_s21 }
 0xd5d   :  { %v1009_v55 = vpop.permute.xlu1 %1008 }
 0xd5e   :  { %1012 = vst.msk [vmem:[#allocation3 + $0x20] sm:$0xff] %vm54_vm0, %v1009_v55 }
 0xd61   :  { %v1017_v30 = vpop.permute.xlu0 %1016 }
 0xd62   :  { %v1019_v31 = vsel %vm54_vm0, %v1009_v55, %v1017_v30 }
 0xd63   :  { %1838 = vmatmul.mubr.msk.f32.vlgmr.msra.gmra.mxu1 %vm193_vm1, %v1019_v31 }
 0xd64   :  { %1354 = vmatpush1.msra.mxu1 %v2071_v32  ;;  %1401 = vmatprep.mubr.f32.mxu1 %v2088_v3  ;;  %v2076_v3 = vld [vmem:[%s2722_s2 + $0x48] sm:$0xff] }
 0xd65   :  { %1355 = vmatprep.subr.mxu1 %v2072_v33 }
 0xd66   :  { %1356 = vmatpush1.msra.mxu1 %v2073_v34 }
 0xd67   :  { %1357 = vmatprep.subr.mxu1 %v2074_v35 }
 0xd68   :  { %1358 = vmatpush1.msra.mxu1 %v2075_v36  ;;  %v2087_v36 = vld [vmem:[#allocation2 + $0x10] sm:$0xff] }
 0xd69   :  { %1359 = vmatprep.subr.mxu1 %v2076_v3 }
 0xd6a   :  { %1360 = vmatpush1.msra.mxu1 %v2077_v37 }
 0xd6b   :  { %1361 = vmatprep.subr.mxu1 %v2078_v39 }
 0xd6c   :  { %1362 = vmatpush1.msra.mxu1 %v2079_v40 }
 0xd6d   :  { %1363 = vmatprep.subr.mxu1 %v2080_v43 }
 0xd6e   :  { %1364 = vmatpush1.msra.mxu1 %v2081_v38 }
 0xd6f   :  { %1365 = vmatprep.subr.mxu1 %v2082_v44 }
 0xd70   :  { %1366 = vmatpush1.msra.mxu1 %v2083_v45 }
 0xd71   :  { %1367 = vmatprep.subr.mxu1 %v2084_v42 }
 0xd72   :  { %1368 = vmatpush1.msra.mxu1 %v2085_v47 }
 0xe23   :  { %v1089_v4 = vpop.f32.mrf.mxu1 }
 0xe24   :  { %v1104_v6 = vadd.f32 %v1089_v4, %v2346_v48  ;;  %v1097_v14 = vadd.f32 %v1089_v4, %v2366_v7  ;;  %v1127_v16 = vadd.f32 %v1089_v4, %v2350_v52 }
 0xe25   :  { %v1091_v8 = vpop.f32.mrf.mxu1 }
 0xe26   :  { %v1141_v12 = vadd.f32 %v2579_v10, %v1091_v8  ;;  %1106 = vrot.lane.b32.xlu1 %v1104_v6, %s2089_s27  ;;  %v1839_v18 = vmul.f32 -1.442695, %v1097_v14  ;;  %v1840_v19 = vmul.f32 -1.442695, %v1127_v16  ;;  %v1134_v58 = vadd.f32 %v1096_v53, %v1091_v8  ;;  %v1253_v16 = vld [vmem:[#allocation2 + $0x18] sm:$0xff] }
 0xe28   :  { %1143 = vrot.lane.b32.xlu0 %v1141_v12, %s2089_s27  ;;  %2023 = vpow2.f32 %v1839_v18  ;;  %v1841_v60 = vmul.f32 -1.442695, %v1134_v58 }
 0xe29   :  { %2025 = vpow2.f32 %v1840_v19 }
 0xe35   :  { %v2024_v20 = vpop.eup %2023 }
 0xe36   :  { %v2026_v21 = vpop.eup %2025  ;;  %v1101_v23 = vadd.f32 1.0, %v2024_v20 }
 0xe37   :  { %v1131_v25 = vadd.f32 1.0, %v2026_v21 }
 0xe38   :  { %2027 = vrcp.f32 %v1101_v23 }
 0xe39   :  { %2029 = vrcp.f32 %v1131_v25 }
 0xe45   :  { %v2028_v24 = vpop.eup %2027 }
 0xe46   :  { %v2030_v49 = vpop.eup %2029  ;;  %v1116_v0 = vsub.f32 1.0, %v2028_v24 }
 0xe98   :  { %v1107_v26 = vpop.permute.xlu1 %1106 }
 0xe99   :  { %v1109_v27 = vmul.f32 %v2028_v24, %v1107_v26 }
 0xe9a   :  { %v1144_v50 = vpop.permute.xlu0 %1143 }
 0xe9b   :  { %v1146_v59 = vmul.f32 %v2030_v49, %v1144_v50  ;;  %1111 = vrot.lane.b32.xlu1 %v1109_v27, %s2089_s27 }
 0xe9d   :  { %1148 = vrot.lane.b32.xlu0 %v1146_v59, %s2089_s27 }
 0xea1   :  { %1122 = vrot.lane.b32.xlu0 %v1019_v31, %s2091_s21 }
 0xea5   :  { %1159 = vrot.lane.b32.xlu0 %v1019_v31, %s2090_s3 }
 0xf0d   :  { %v1112_v52 = vpop.permute.xlu1 %1111 }
 0xf0e   :  { %v1114_v51 = vadd.f32 %v1112_v52, %v2366_v7 }
 0xf0f   :  { %v1149_v54 = vpop.permute.xlu0 %1148 }
 0xf10   :  { %2031 = vtanh.f32 %v1114_v51  ;;  %v1151_v1 = vadd.f32 %v1149_v54, %v1096_v53 }
 0xf12   :  { %2033 = vtanh.f32 %v1151_v1 }
 0xf13   :  { %2035 = vpow2.f32 %v1841_v60  ;;  %v1123_v41 = vpop.permute.xlu0 %1122 }
 0xf14   :  { %v1125_v2 = vmul.f32 %v2028_v24, %v1123_v41 }
 0xf17   :  { %v1160_v9 = vpop.permute.xlu0 %1159 }
 0xf1d   :  { %v2032_v56 = vpop.eup %2031 }
 0xf1e   :  { %1118 = vrot.lane.b32.xlu1 %v2032_v56, %s2090_s3 }
 0xf1f   :  { %v2034_v57 = vpop.eup %2033 }
 0xf20   :  { %v2036_v61 = vpop.eup %2035 }
 0xf21   :  { %v1138_v62 = vadd.f32 1.0, %v2036_v61 }
 0xf22   :  { %1155 = vrot.lane.b32.xlu1 %v2034_v57, %s2090_s3 }
 0xf23   :  { %2037 = vrcp.f32 %v1138_v62  ;;  %v1487_v62 = vld [vmem:[#allocation3 + $0x10] sm:$0xff] }
 0xf30   :  { %v2038_v7 = vpop.eup %2037 }
 0xf31   :  { %v1153_v46 = vsub.f32 1.0, %v2038_v7  ;;  %v1162_v17 = vmul.f32 %v2038_v7, %v1160_v9  ;;  %v2625_v7 = vld [vmem:[%s2726_s5 + $0x10] sm:$0xff]  ;;  %v1488_v9 = vld [vmem:[#allocation3 + $0x18] sm:$0xff] }
 0xf90   :  { %v1119_v63 = vpop.permute.xlu1 %1118 }
 0xf91   :  { %v1121_v5 = vmul.f32 %v1119_v63, %v1116_v0  ;;  %v1495_v63 = vmax.f32 %v1487_v62, 0.0 }
 0xf93   :  { %v1126_v11 = vadd.f32 %v1125_v2, %v1121_v5  ;;  %v2633_v2 = vld [vmem:[%s2726_s5 + $0x8] sm:$0xff]  ;;  %v2640_v5 = vld [vmem:[%s2726_s5] sm:$0xff] }
 0xf94   :  { %v1156_v13 = vpop.permute.xlu1 %1155 }
 0xf95   :  { %v1158_v22 = vmul.f32 %v1156_v13, %v1153_v46  ;;  %1165 = vrot.lane.b32.xlu1 %v1126_v11, %s2090_s3  ;;  %v1489_v11 = vld [vmem:[#allocation3 + $0x20] sm:$0xff]  ;;  %v1496_v46 = vmax.f32 %v1488_v9, 0.0 }
 0xf96   :  { %v1497_v13 = vmax.f32 %v1489_v11, 0.0 }
 0xf97   :  { %v1163_v28 = vadd.f32 %v1162_v17, %v1158_v22 }
 0xf99   :  { %1171 = vst.msk [vmem:[#allocation4 + $0x10] sm:$0xff] %vm54_vm0, %v1163_v28  ;;  %1173 = vrot.lane.b32.xlu0 %v1163_v28, %s2091_s21 }
0x1007   :  { %v1166_v29 = vpop.permute.xlu1 %1165 }
0x1008   :  { %1169 = vst.msk [vmem:[#allocation3 + $0x28] sm:$0xff] %vm54_vm0, %v1166_v29 }
0x100b   :  { %v1174_v55 = vpop.permute.xlu0 %1173 }
0x100c   :  { %v1176_v30 = vsel %vm54_vm0, %v1166_v29, %v1174_v55 }
0x100d   :  { %1842 = vmatmul.mubr.msk.f32.vlgmr.msra.gmra.mxu0 %vm193_vm1, %v1176_v30 }
0x100f   :  { %v1490_v17 = vld [vmem:[#allocation3 + $0x28] sm:$0xff] }
0x1010   :  { %v1498_v28 = vmax.f32 %v1490_v17, 0.0 }
0x10cd   :  { %v1246_v31 = vpop.f32.mrf.mxu0 }
0x10ce   :  { %v1261_v32 = vadd.f32 %v1246_v31, %v2346_v48  ;;  %v1254_v35 = vadd.f32 %v1246_v31, %v2369_v15  ;;  %v1284_v3 = vadd.f32 %v2087_v36, %v1246_v31 }
0x10cf   :  { %v1248_v33 = vpop.f32.mrf.mxu0 }
0x10d0   :  { %v1298_v34 = vadd.f32 %v2579_v10, %v1248_v33  ;;  %1263 = vrot.lane.b32.xlu1 %v1261_v32, %s2089_s27  ;;  %v1843_v37 = vmul.f32 -1.442695, %v1254_v35  ;;  %v1844_v39 = vmul.f32 -1.442695, %v1284_v3  ;;  %v1291_v23 = vadd.f32 %v1253_v16, %v1248_v33  ;;  %v1408_v33 = vld [vmem:[#allocation2 + $0x70] sm:$0xff]  ;;  %v1409_v35 = vld [vmem:[#allocation2] sm:$0xff] }
0x10d2   :  { %1300 = vrot.lane.b32.xlu0 %v1298_v34, %s2089_s27  ;;  %2039 = vpow2.f32 %v1843_v37  ;;  %v1845_v25 = vmul.f32 -1.442695, %v1291_v23 }
0x10d3   :  { %2041 = vpow2.f32 %v1844_v39 }
0x10df   :  { %v2040_v40 = vpop.eup %2039 }
0x10e0   :  { %v2042_v43 = vpop.eup %2041  ;;  %v1258_v38 = vadd.f32 1.0, %v2040_v40 }
0x10e1   :  { %v1288_v44 = vadd.f32 1.0, %v2042_v43 }
0x10e2   :  { %2043 = vrcp.f32 %v1258_v38 }
0x10e3   :  { %2045 = vrcp.f32 %v1288_v44 }
0x10ef   :  { %v2044_v45 = vpop.eup %2043 }
0x10f0   :  { %v2046_v4 = vpop.eup %2045  ;;  %v1273_v49 = vsub.f32 1.0, %v2044_v45 }
0x1142   :  { %v1264_v42 = vpop.permute.xlu1 %1263 }
0x1143   :  { %v1266_v47 = vmul.f32 %v2044_v45, %v1264_v42 }
0x1144   :  { %v1301_v6 = vpop.permute.xlu0 %1300 }
0x1145   :  { %v1303_v8 = vmul.f32 %v2046_v4, %v1301_v6  ;;  %1268 = vrot.lane.b32.xlu1 %v1266_v47, %s2089_s27 }
0x1147   :  { %1305 = vrot.lane.b32.xlu0 %v1303_v8, %s2089_s27  ;;  %v1410_v8 = vld [vmem:[#allocation2 + $0x8] sm:$0xff] }
0x114b   :  { %1279 = vrot.lane.b32.xlu0 %v1176_v30, %s2091_s21 }
0x114f   :  { %1316 = vrot.lane.b32.xlu0 %v1176_v30, %s2090_s3 }
0x11b7   :  { %v1269_v12 = vpop.permute.xlu1 %1268 }
0x11b8   :  { %v1271_v14 = vadd.f32 %v1269_v12, %v2369_v15  ;;  %v2614_v15 = vld [vmem:[%s2726_s5 + $0x18] sm:$0xff] }
0x11b9   :  { %v1306_v18 = vpop.permute.xlu0 %1305  ;;  %1931 = vmatprep.subr.mxu1 %v2614_v15 }
0x11ba   :  { %2047 = vtanh.f32 %v1271_v14  ;;  %v1308_v19 = vadd.f32 %v1306_v18, %v1253_v16  ;;  %v1524_v16 = vld [vmem:[%s2726_s5 + $0x38] sm:$0xff]  ;;  %v1523_v18 = vld [vmem:[%s2726_s5 + $0x30] sm:$0xff] }
0x11bb   :  { %1891 = vmatprep.subr.mxu0 %v1524_v16 }
0x11bc   :  { %2049 = vtanh.f32 %v1308_v19  ;;  %1892 = vmatpush3.msra.mxu0 %v1524_v16  ;;  %v1522_v19 = vld [vmem:[%s2726_s5 + $0x28] sm:$0xff] }
0x11bd   :  { %2051 = vpow2.f32 %v1845_v25  ;;  %v1280_v27 = vpop.permute.xlu0 %1279  ;;  %1893 = vmatprep.subr.mxu0 %v1523_v18 }
0x11be   :  { %v1282_v52 = vmul.f32 %v2044_v45, %v1280_v27  ;;  %1894 = vmatpush3.msra.mxu0 %v1523_v18 }
0x11bf   :  { %1895 = vmatprep.subr.mxu0 %v1522_v19 }
0x11c0   :  { %1896 = vmatpush3.msra.mxu0 %v1522_v19 }
0x11c1   :  { %v1317_v53 = vpop.permute.xlu0 %1316 }
0x11c7   :  { %v2048_v20 = vpop.eup %2047 }
0x11c8   :  { %1275 = vrot.lane.b32.xlu1 %v2048_v20, %s2090_s3 }
0x11c9   :  { %v2050_v21 = vpop.eup %2049 }
0x11ca   :  { %v2052_v24 = vpop.eup %2051 }
0x11cb   :  { %v1295_v26 = vadd.f32 1.0, %v2052_v24 }
0x11cc   :  { %1312 = vrot.lane.b32.xlu1 %v2050_v21, %s2090_s3  ;;  %v1521_v21 = vld [vmem:[%s2726_s5 + $0x20] sm:$0xff] }
0x11cd   :  { %2053 = vrcp.f32 %v1295_v26  ;;  %1897 = vmatprep.subr.mxu0 %v1521_v21 }
0x11ce   :  { %1898 = vmatpush3.msra.mxu0 %v1521_v21 }
0x11cf   :  { %1911 = vmatprep.subr.mxu0 %v2614_v15 }
0x11da   :  { %v2054_v50 = vpop.eup %2053 }
0x11db   :  { %v1310_v1 = vsub.f32 1.0, %v2054_v50  ;;  %v1319_v57 = vmul.f32 %v2054_v50, %v1317_v53 }
0x123a   :  { %v1276_v59 = vpop.permute.xlu1 %1275 }
0x123b   :  { %v1278_v51 = vmul.f32 %v1276_v59, %v1273_v49 }
0x123d   :  { %v1283_v54 = vadd.f32 %v1282_v52, %v1278_v51 }
0x123e   :  { %v1313_v56 = vpop.permute.xlu1 %1312 }
0x123f   :  { %v1315_v58 = vmul.f32 %v1313_v56, %v1310_v1  ;;  %1322 = vrot.lane.b32.xlu1 %v1283_v54, %s2090_s3 }
0x1241   :  { %v1320_v60 = vadd.f32 %v1319_v57, %v1315_v58 }
0x1243   :  { %1328 = vst.msk [vmem:[#allocation4 + $0x8] sm:$0xff] %vm54_vm0, %v1320_v60  ;;  %1330 = vrot.lane.b32.xlu0 %v1320_v60, %s2091_s21 }
0x124a   :  { %v1502_v62 = vld [vmem:[#allocation4 + $0x8] sm:$0xff] }
0x124b   :  { %v1510_v9 = vmax.f32 %v1502_v62, 0.0 }
0x12b1   :  { %v1323_v61 = vpop.permute.xlu1 %1322 }
0x12b2   :  { %1326 = vst.msk [vmem:[#allocation3 + $0x30] sm:$0xff] %vm54_vm0, %v1323_v61 }
0x12b5   :  { %v1331_v41 = vpop.permute.xlu0 %1330 }
0x12b6   :  { %v1333_v0 = vsel %vm54_vm0, %v1323_v61, %v1331_v41 }
0x12b7   :  { %1846 = vmatmul.mubr.msk.f32.vlgmr.msra.gmra.mxu1 %vm193_vm1, %v1333_v0 }
0x12b8   :  { %1935 = vmatpush3.msra.mxu1 %v2614_v15  ;;  %1922 = vmatprep.mubr.msk.f32.mxu1 %vm54_vm0, %v1495_v63 }
0x12b9   :  { %1932 = vmatprep.subr.mxu1 %v2625_v7  ;;  %v1491_v22 = vld [vmem:[#allocation3 + $0x30] sm:$0xff] }
0x12ba   :  { %1936 = vmatpush3.msra.mxu1 %v2625_v7  ;;  %v1499_v29 = vmax.f32 %v1491_v22, 0.0 }
0x12bb   :  { %1933 = vmatprep.subr.mxu1 %v2633_v2 }
0x12bc   :  { %1937 = vmatpush3.msra.mxu1 %v2633_v2 }
0x12bd   :  { %1934 = vmatprep.subr.mxu1 %v2640_v5 }
0x12be   :  { %1938 = vmatpush3.msra.mxu1 %v2640_v5 }
0x12bf   :  { %1923 = vmatmul.mubr.msk.f32.vlgmr.msra.gmra.mxu1 %vm54_vm0, %v1496_v46  ;;  %v1504_v46 = vld [vmem:[#allocation4 + $0x18] sm:$0xff] }
0x12c0   :  { %1925 = vmatprep.mubr.msk.f32.mxu1 %vm54_vm0, %v1497_v13  ;;  %v1505_v13 = vld [vmem:[#allocation4 + $0x20] sm:$0xff]  ;;  %v1512_v17 = vmax.f32 %v1504_v46, 0.0 }
0x12c1   :  { %v1513_v22 = vmax.f32 %v1505_v13, 0.0 }
0x12c3   :  { %1926 = vmatmul.mubr.msk.f32.gmra.mxu1 %vm54_vm0, %v1498_v28  ;;  %v1506_v28 = vld [vmem:[#allocation4 + $0x28] sm:$0xff] }
0x12c4   :  { %1928 = vmatprep.mubr.msk.f32.mxu1 %vm54_vm0, %v1499_v29  ;;  %v1507_v29 = vld [vmem:[#allocation4 + $0x30] sm:$0xff] }
0x1377   :  { %v1403_v55 = vpop.f32.mrf.mxu1 }
0x1378   :  { %v1418_v30 = vadd.f32 %v1403_v55, %v2346_v48  ;;  %v1411_v34 = vadd.f32 %v1408_v33, %v1403_v55  ;;  %v1441_v36 = vadd.f32 %v1409_v35, %v1403_v55  ;;  %v1514_v55 = vmax.f32 %v1506_v28, 0.0 }
0x1379   :  { %v1405_v31 = vpop.f32.mrf.mxu1 }
0x137a   :  { %v1455_v32 = vadd.f32 %v2579_v10, %v1405_v31  ;;  %1420 = vrot.lane.b32.xlu1 %v1418_v30, %s2089_s27  ;;  %v1847_v3 = vmul.f32 -1.442695, %v1411_v34  ;;  %v1848_v37 = vmul.f32 -1.442695, %v1441_v36  ;;  %v1448_v25 = vadd.f32 %v1410_v8, %v1405_v31  ;;  %v1508_v30 = vld [vmem:[#allocation4 + $0x38] sm:$0xff]  ;;  %v1485_v31 = vld [vmem:[#allocation3] sm:$0xff] }
0x137c   :  { %1457 = vrot.lane.b32.xlu0 %v1455_v32, %s2089_s27  ;;  %2055 = vpow2.f32 %v1847_v3  ;;  %v1849_v24 = vmul.f32 -1.442695, %v1448_v25  ;;  %v1493_v32 = vmax.f32 %v1485_v31, 0.0 }
0x137d   :  { %2057 = vpow2.f32 %v1848_v37 }
0x137f   :  { %v1924_v36 = vpop.f32.mrf.mxu1 }
0x1381   :  { %v1754_v37 = vpop.f32.mrf.mxu1 }
0x1389   :  { %v2056_v39 = vpop.eup %2055 }
0x138a   :  { %v2058_v40 = vpop.eup %2057  ;;  %v1415_v43 = vadd.f32 1.0, %v2056_v39 }
0x138b   :  { %v1445_v38 = vadd.f32 1.0, %v2058_v40 }
0x138c   :  { %2059 = vrcp.f32 %v1415_v43  ;;  %v1866_v43 = vld [vmem:[%s2727_s6] ss:$0 sm:$0xff] }
0x138d   :  { %2061 = vrcp.f32 %v1445_v38 }
0x1399   :  { %v2060_v48 = vpop.eup %2059 }
0x139a   :  { %v2062_v45 = vpop.eup %2061  ;;  %v1430_v50 = vsub.f32 1.0, %v2060_v48 }
0x13ec   :  { %v1421_v10 = vpop.permute.xlu1 %1420 }
0x13ed   :  { %v1423_v44 = vmul.f32 %v2060_v48, %v1421_v10 }
0x13ee   :  { %v1458_v42 = vpop.permute.xlu0 %1457 }
0x13ef   :  { %v1460_v47 = vmul.f32 %v2062_v45, %v1458_v42  ;;  %1425 = vrot.lane.b32.xlu1 %v1423_v44, %s2089_s27 }
0x13f1   :  { %1462 = vrot.lane.b32.xlu0 %v1460_v47, %s2089_s27 }
0x13f5   :  { %1436 = vrot.lane.b32.xlu0 %v1333_v0, %s2091_s21 }
0x13f9   :  { %1473 = vrot.lane.b32.xlu0 %v1333_v0, %s2090_s3  ;;  %v1503_v0 = vld [vmem:[#allocation4 + $0x10] sm:$0xff] }
0x13fa   :  { %v1511_v11 = vmax.f32 %v1503_v0, 0.0 }
0x1461   :  { %v1426_v4 = vpop.permute.xlu1 %1425 }
0x1462   :  { %v1428_v6 = vadd.f32 %v1426_v4, %v1408_v33  ;;  %v1486_v33 = vld [vmem:[#allocation3 + $0x8] sm:$0xff] }
0x1463   :  { %v1463_v12 = vpop.permute.xlu0 %1462 }
0x1464   :  { %2063 = vtanh.f32 %v1428_v6  ;;  %v1465_v14 = vadd.f32 %v1463_v12, %v1410_v8 }
0x1466   :  { %2065 = vtanh.f32 %v1465_v14 }
0x1467   :  { %2067 = vpow2.f32 %v1849_v24  ;;  %v1437_v49 = vpop.permute.xlu0 %1436 }
0x1468   :  { %v1439_v51 = vmul.f32 %v2060_v48, %v1437_v49  ;;  %v1927_v48 = vpop.f32.mrf.mxu1 }
0x146a   :  { %v1764_v6 = vpop.f32.mrf.mxu1 }
0x146b   :  { %v1474_v54 = vpop.permute.xlu0 %1473 }
0x1471   :  { %v2064_v20 = vpop.eup %2063 }
0x1472   :  { %1432 = vrot.lane.b32.xlu1 %v2064_v20, %s2090_s3 }
0x1473   :  { %v2066_v23 = vpop.eup %2065 }
0x1474   :  { %v2068_v26 = vpop.eup %2067 }
0x1475   :  { %v1452_v27 = vadd.f32 1.0, %v2068_v26 }
0x1476   :  { %1469 = vrot.lane.b32.xlu1 %v2066_v23, %s2090_s3 }
0x1477   :  { %2069 = vrcp.f32 %v1452_v27 }
0x1484   :  { %v2070_v59 = vpop.eup %2069 }
0x1485   :  { %v1467_v56 = vsub.f32 1.0, %v2070_v59  ;;  %v1476_v58 = vmul.f32 %v2070_v59, %v1474_v54 }
0x14e4   :  { %v1433_v52 = vpop.permute.xlu1 %1432 }
0x14e5   :  { %v1435_v53 = vmul.f32 %v1433_v52, %v1430_v50 }
0x14e7   :  { %v1440_v1 = vadd.f32 %v1439_v51, %v1435_v53 }
0x14e8   :  { %v1470_v57 = vpop.permute.xlu1 %1469 }
0x14e9   :  { %v1472_v60 = vmul.f32 %v1470_v57, %v1467_v56  ;;  %1479 = vrot.lane.b32.xlu1 %v1440_v1, %s2090_s3 }
0x14eb   :  { %v1477_v61 = vadd.f32 %v1476_v58, %v1472_v60 }
0x14ed   :  { %1484 = vst.msk [vmem:[#allocation4] sm:$0xff] %vm54_vm0, %v1477_v61 }
0x14f4   :  { %v1501_v41 = vld [vmem:[#allocation4] sm:$0xff] }
0x14f5   :  { %v1509_v63 = vmax.f32 %v1501_v41, 0.0 }
0x14f7   :  { %1899 = vmatprep.mubr.msk.f32.mxu0 %vm54_vm0, %v1509_v63 }
0x14f8   :  { %1900 = vmatmul.mubr.msk.f32.vlgmr.msra.gmra.mxu0 %vm54_vm0, %v1510_v9 }
0x14f9   :  { %1902 = vmatprep.mubr.msk.f32.mxu0 %vm54_vm0, %v1511_v11  ;;  %1912 = vmatpush3.msra.mxu0 %v2614_v15  ;;  %v1515_v15 = vmax.f32 %v1507_v29, 0.0 }
0x14fa   :  { %1913 = vmatprep.subr.mxu0 %v2625_v7 }
0x14fb   :  { %1914 = vmatpush3.msra.mxu0 %v2625_v7  ;;  %v1516_v7 = vmax.f32 %v1508_v30, 0.0 }
0x14fc   :  { %1903 = vmatmul.mubr.msk.f32.gmra.mxu0 %vm54_vm0, %v1512_v17  ;;  %1915 = vmatprep.subr.mxu0 %v2633_v2 }
0x14fd   :  { %1905 = vmatprep.mubr.msk.f32.mxu0 %vm54_vm0, %v1513_v22  ;;  %1916 = vmatpush3.msra.mxu0 %v2633_v2  ;;  %v1494_v2 = vmax.f32 %v1486_v33, 0.0 }
0x14fe   :  { %1917 = vmatprep.subr.mxu0 %v2640_v5 }
0x14ff   :  { %1918 = vmatpush3.msra.mxu0 %v2640_v5 }
0x1500   :  { %1906 = vmatmul.mubr.msk.f32.gmra.mxu0 %vm54_vm0, %v1514_v55 }
0x1501   :  { %1908 = vmatprep.mubr.msk.f32.mxu0 %vm54_vm0, %v1515_v15 }
0x1504   :  { %1909 = vmatmul.mubr.msk.f32.gmra.mxu0 %vm54_vm0, %v1516_v7 }
0x1505   :  { %1919 = vmatprep.mubr.msk.f32.mxu0 %vm54_vm0, %v1493_v32 }
0x1508   :  { %1920 = vmatmul.mubr.msk.f32.vlgmr.msra.gmra.mxu0 %vm54_vm0, %v1494_v2 }
0x155b   :  { %v1480_v34 = vpop.permute.xlu1 %1479 }
0x155c   :  { %1483 = vst.msk [vmem:[#allocation3 + $0x38] sm:$0xff] %vm54_vm0, %v1480_v34 }
0x1563   :  { %v1492_v35 = vld [vmem:[#allocation3 + $0x38] sm:$0xff] }
0x1564   :  { %v1500_v5 = vmax.f32 %v1492_v35, 0.0 }
0x1566   :  { %1929 = vmatmul.mubr.msk.f32.gmra.mxu1 %vm54_vm0, %v1500_v5 }
0x15b8   :  { %v1901_v3 = vpop.f32.mrf.mxu0 }
0x15ba   :  { %v1615_v39 = vpop.f32.mrf.mxu0 }
0x15bc   :  { %v1904_v40 = vpop.f32.mrf.mxu0 }
0x15bd   :  { %v1760_v38 = vadd.f32 %v1924_v36, %v1904_v40 }
0x15be   :  { %v1625_v10 = vpop.f32.mrf.mxu0 }
0x15bf   :  { %v1793_v44 = vadd.f32 %v1866_v43, %v1760_v38  ;;  %v1755_v45 = vadd.f32 %v1754_v37, %v1625_v10 }
0x15c0   :  { %v1907_v42 = vpop.f32.mrf.mxu0 }
0x15c1   :  { %1801 = vst [vmem:[%s2728_s7 + $0x18] sm:$0xff] %v1793_v44  ;;  %v1792_v47 = vadd.f32 %v1866_v43, %v1755_v45  ;;  %v1770_v4 = vadd.f32 %v1927_v48, %v1907_v42 }
0x15c2   :  { %v1635_v8 = vpop.f32.mrf.mxu0 }
0x15c3   :  { %1800 = vst [vmem:[%s2728_s7 + $0x10] sm:$0xff] %v1792_v47  ;;  %v1795_v12 = vadd.f32 %v1866_v43, %v1770_v4  ;;  %v1765_v14 = vadd.f32 %v1764_v6, %v1635_v8 }
0x15c4   :  { %v1910_v16 = vpop.f32.mrf.mxu0 }
0x15c5   :  { %1803 = vst [vmem:[%s2728_s7 + $0x28] sm:$0xff] %v1795_v12  ;;  %v1794_v18 = vadd.f32 %v1866_v43, %v1765_v14 }
0x15c6   :  { %v1645_v19 = vpop.f32.mrf.mxu0 }
0x15c7   :  { %1802 = vst [vmem:[%s2728_s7 + $0x20] sm:$0xff] %v1794_v18 }
0x15c8   :  { %v1921_v20 = vpop.f32.mrf.mxu0 }
0x15c9   :  { %v1750_v21 = vadd.f32 %v1921_v20, %v1901_v3 }
0x15ca   :  { %v1744_v23 = vpop.f32.mrf.mxu0 }
0x15cb   :  { %v1791_v25 = vadd.f32 %v1866_v43, %v1750_v21  ;;  %v1745_v24 = vadd.f32 %v1744_v23, %v1615_v39 }
0x15cd   :  { %1799 = vst [vmem:[%s2728_s7 + $0x8] sm:$0xff] %v1791_v25  ;;  %v1790_v26 = vadd.f32 %v1866_v43, %v1745_v24 }
0x15cf   :  { %1798 = vst [vmem:[%s2728_s7] sm:$0xff] %v1790_v26 }
0x1626   :  { %v1930_v27 = vpop.f32.mrf.mxu1 }
0x1627   :  { %v1780_v49 = vadd.f32 %v1930_v27, %v1910_v16 }
0x1628   :  { %v1774_v50 = vpop.f32.mrf.mxu1 }
0x1629   :  { %v1797_v59 = vadd.f32 %v1866_v43, %v1780_v49  ;;  %v1775_v52 = vadd.f32 %v1774_v50, %v1645_v19 }
0x162b   :  { %1805 = vst [vmem:[%s2728_s7 + $0x38] sm:$0xff] %v1797_v59  ;;  %v1796_v51 = vadd.f32 %v1866_v43, %v1775_v52 }
0x162d   :  { %1804 = vst [vmem:[%s2728_s7 + $0x30] sm:$0xff] %v1796_v51 }

</bundles_post_ra>
